<compile_context>
chip_gen: v7x
topology: tpu7x:2x2x1
jax: 0.10.0
libtpu: 0.0.40
codegen_flags: <defaults>
</compile_context>

<pallas_src>
import functools

import jax
import jax.numpy as jnp
from jax.experimental import pallas as pl
from jax.experimental.pallas import tpu as pltpu

# Lane margin around the flat slab: keeps every 3x3 tap slice in-bounds and
# makes the slab interior store start 128-lane aligned.
_MARGIN = 128


# ----------------------------------------------------------------------------
# Fused kernel: conv3x3+ReLU -> conv1x1+ReLU -> conv3x3+ReLU -> conv1x1
#               -> InstanceNorm2d(affine), one batch element per grid step.
# ----------------------------------------------------------------------------
def _scm_fused_kernel(x_ref, w0_ref, b0_ref, w1_ref, b1_ref, w2_ref, b2_ref,
                      w3_ref, b3_ref, g_ref, beta_ref, mask_ref,
                      o_ref, slab_ref, *, H, W, eps):
    Wp, Hp = W + 2, H + 2
    L = Hp * Wp                         # padded plane, flattened on the lane axis
    inv_hw = 1.0 / float(H * W)
    c1 = w0_ref.shape[0]                # C/4
    c2 = w1_ref.shape[0]                # C/2

    # Flat lane shift of the 9 taps of a same-padded 3x3 conv.
    taps = [(dy - 1) * Wp + (dx - 1) for dy in range(3) for dx in range(3)]

    interior = mask_ref[...] > 0.5                                    # (1, L)

    # ---- conv0: 3x3, 3 -> C/4, bias + ReLU (VPU) ---------------------------
    # Cin=3 would waste the 128/256-deep MXU, so run it as 27 broadcast FMAs
    # into a lane-dense channels-major (c1, L) f32 accumulator.
    acc0 = jnp.zeros((c1, L), jnp.float32)
    for k, s in enumerate(taps):
        xs = x_ref[0, :, _MARGIN + s:_MARGIN + s + L].astype(jnp.float32)  # (3, L)
        for ci in range(3):
            w_col = w0_ref[:, 3 * k + ci:3 * k + ci + 1]              # (c1, 1)
            acc0 = acc0 + w_col * xs[ci:ci + 1, :]
    h0 = jnp.maximum(acc0 + b0_ref[...], 0.0)                         # (c1, L)

    # ---- conv1: 1x1, C/4 -> C/2, bias + ReLU (MXU, bf16 in / f32 acc) ------
    h1 = jnp.dot(w1_ref[...], h0.astype(jnp.bfloat16),
                 preferred_element_type=jnp.float32) + b1_ref[...]
    h1 = jnp.maximum(h1, 0.0)                                         # (c2, L)

    # conv2 needs a zero 1-px halo ring; rewrite it as exact zeros every grid
    # step (no full-scratch memset), then park the slab once, lane-dense and
    # 128-aligned, in VMEM.
    h1 = jnp.where(interior, h1, 0.0)
    slab_ref[:, _MARGIN:_MARGIN + L] = h1.astype(jnp.bfloat16)

    # ---- conv2: 3x3, C/2 -> C/2, bias + ReLU (single K=9*c2 MXU matmul) ----
    # The 9 taps are shifted lane-windows of the slab (plain offset loads, no
    # per-tap reshape/relayout); stacking them along sublanes is tile-aligned.
    # Slab margins are only ever read for halo output columns, which never
    # reach the stored interior (masked out of the IN stats below).
    x2 = jnp.concatenate(
        [slab_ref[:, _MARGIN + s:_MARGIN + s + L] for s in taps], axis=0)  # (9*c2, L)
    h2 = jnp.dot(w2_ref[...], x2,
                 preferred_element_type=jnp.float32) + b2_ref[...]
    h2 = jnp.maximum(h2, 0.0)                                         # (c2, L)

    # ---- conv3: 1x1, C/2 -> C, bias, no ReLU -------------------------------
    h3 = jnp.dot(w3_ref[...], h2.astype(jnp.bfloat16),
                 preferred_element_type=jnp.float32) + b3_ref[...]    # (C, L)

    # ---- InstanceNorm2d(affine): masked f32 stats over the H*W interior ----
    # (lane reduction on the XLU, rsqrt on the EUP)
    s1 = jnp.sum(jnp.where(interior, h3, 0.0), axis=1, keepdims=True)
    mean = s1 * inv_hw                                                # (C, 1)
    diff = jnp.where(interior, h3 - mean, 0.0)
    var = jnp.sum(diff * diff, axis=1, keepdims=True) * inv_hw        # biased
    y = (h3 - mean) * jax.lax.rsqrt(var + eps)
    y = y * g_ref[...] + beta_ref[...]

    o_ref[0] = y.astype(o_ref.dtype)                                  # (C, L)


# ----------------------------------------------------------------------------
# Wrapper
# ----------------------------------------------------------------------------
def scm_forward_pallas(x_nchw, params, *, eps=1e-5):
    N, Cin, H, W = x_nchw.shape
    assert Cin == 3
    C = params["w3"].shape[-1]
    c1, c2 = C // 4, C // 2
    Hp, Wp = H + 2, W + 2
    assert _MARGIN >= Wp + 1, "image too wide for the fixed lane margin"
    L = Hp * Wp
    HW = H * W
    M = L + 2 * _MARGIN

    # Only wrapper-side input layout work: the 3-channel image is already
    # channels-major (NCHW); add the 1-px zero halo, flatten the padded plane
    # onto the lane axis and add the zero lane margins once.
    xpad = jnp.pad(x_nchw, ((0, 0), (0, 0), (1, 1), (1, 1)))
    xflat = jnp.pad(xpad.reshape(N, Cin, L), ((0, 0), (0, 0), (_MARGIN, _MARGIN)))

    f32, bf16 = jnp.float32, jnp.bfloat16
    # Channels-major weights; bf16 at the MXU boundaries (f32 accumulation).
    w0 = jnp.transpose(params["w0"].reshape(27, c1)).astype(f32)        # (c1, 27) VPU
    b0 = params["b0"].reshape(c1, 1).astype(f32)
    w1 = jnp.transpose(params["w1"].reshape(c1, c2)).astype(bf16)       # (c2, c1)
    b1 = params["b1"].reshape(c2, 1).astype(f32)
    w2 = jnp.transpose(params["w2"].reshape(9, c2, c2),
                       (2, 0, 1)).reshape(c2, 9 * c2).astype(bf16)      # (c2, 9*c2)
    b2 = params["b2"].reshape(c2, 1).astype(f32)
    w3 = jnp.transpose(params["w3"].reshape(c2, C)).astype(bf16)        # (C, c2)
    b3 = params["b3"].reshape(C, 1).astype(f32)
    gamma = params["gamma"].reshape(C, 1).astype(f32)
    beta = params["beta"].reshape(C, 1).astype(f32)
    # 1.0 on the H*W interior of the padded plane, 0.0 on the 1-px halo ring.
    mask = jnp.pad(jnp.ones((H, W), f32), ((1, 1), (1, 1))).reshape(1, L)

    flops = (2 * N * L * (27 * c1 + c1 * c2 + 9 * c2 * c2 + c2 * C)
             + 10 * N * HW * C)
    bytes_accessed = (4 * (xflat.size + N * C * L + w0.size + L)
                      + 2 * (w1.size + w2.size + w3.size)
                      + 4 * (c1 + 2 * c2 + 3 * C))
    # VMEM budget from the actual resident blocks (double-buffered in/out,
    # resident weights, slab scratch) instead of a hard-coded number; stays
    # far below v7x's 64 MiB physical VMEM (and v5e/v6e's 128 MiB).
    resident = (2 * (Cin * M * 4 + C * L * 4) + c2 * M * 2
                + 4 * (w0.size + L) + 2 * (w1.size + w2.size + w3.size)
                + 4 * (c1 + 2 * c2 + 3 * C))
    vmem_limit = int(min(32 * 1024 * 1024, max(4 * 1024 * 1024, 8 * resident)))

    kern = functools.partial(_scm_fused_kernel, H=H, W=W, eps=eps)
    out_flat = pl.pallas_call(
        kern,
        out_shape=jax.ShapeDtypeStruct((N, C, L), x_nchw.dtype),
        grid=(N,),
        in_specs=[
            pl.BlockSpec((1, Cin, M), lambda n: (n, 0, 0)),
            pl.BlockSpec((c1, 27), lambda n: (0, 0)),
            pl.BlockSpec((c1, 1), lambda n: (0, 0)),
            pl.BlockSpec((c2, c1), lambda n: (0, 0)),
            pl.BlockSpec((c2, 1), lambda n: (0, 0)),
            pl.BlockSpec((c2, 9 * c2), lambda n: (0, 0)),
            pl.BlockSpec((c2, 1), lambda n: (0, 0)),
            pl.BlockSpec((C, c2), lambda n: (0, 0)),
            pl.BlockSpec((C, 1), lambda n: (0, 0)),
            pl.BlockSpec((C, 1), lambda n: (0, 0)),
            pl.BlockSpec((C, 1), lambda n: (0, 0)),
            pl.BlockSpec((1, L), lambda n: (0, 0)),
        ],
        out_specs=pl.BlockSpec((1, C, L), lambda n: (n, 0, 0)),
        scratch_shapes=[pltpu.VMEM((c2, M), jnp.bfloat16)],
        compiler_params=pltpu.CompilerParams(
            dimension_semantics=("parallel",),
            vmem_limit_bytes=vmem_limit),
        cost_estimate=pl.CostEstimate(
            flops=int(flops), transcendentals=int(N * C),
            bytes_accessed=int(bytes_accessed)),
    )(xflat, w0, b0, w1, b1, w2, b2, w3, b3, gamma, beta, mask)

    # Drop the 1-px halo of the channels-major padded slab -> NCHW.
    return out_flat.reshape(N, C, Hp, Wp)[:, :, 1:H + 1, 1:W + 1]


# ----------------------------------------------------------------------------
# Deterministic params + pure-JAX reference (for the correctness check)
# ----------------------------------------------------------------------------
def scm_init_params(key, out_plane):
    assert out_plane % 4 == 0
    c1, c2 = out_plane // 4, out_plane // 2
    dims = [(3, 3, 3, c1), (1, 1, c1, c2), (3, 3, c2, c2), (1, 1, c2, out_plane)]
    keys = jax.random.split(key, 2 * len(dims) + 2)
    params = {}
    for i, (kh, kw, ci, co) in enumerate(dims):
        fan_in = kh * kw * ci
        bound = 1.0 / (fan_in ** 0.5)
        params[f"w{i}"] = jax.random.uniform(
            keys[2 * i], (kh, kw, ci, co), jnp.float32, -bound, bound)
        params[f"b{i}"] = jax.random.uniform(
            keys[2 * i + 1], (co,), jnp.float32, -bound, bound)
    params["gamma"] = 1.0 + 0.1 * jax.random.normal(keys[-2], (out_plane,), jnp.float32)
    params["beta"] = 0.1 * jax.random.normal(keys[-1], (out_plane,), jnp.float32)
    return params


def scm_forward_reference(x_nchw, params, eps=1e-5):
    x = x_nchw
    for i, relu in enumerate([True, True, True, False]):
        w = jnp.transpose(params[f"w{i}"], (3, 2, 0, 1))          # HWIO -> OIHW
        x = jax.lax.conv_general_dilated(
            x, w, window_strides=(1, 1), padding="SAME",
            dimension_numbers=("NCHW", "OIHW", "NCHW"))
        x = x + params[f"b{i}"][None, :, None, None]
        if relu:
            x = jnp.maximum(x, 0.0)
    mean = jnp.mean(x, axis=(2, 3), keepdims=True)
    var = jnp.mean((x - mean) ** 2, axis=(2, 3), keepdims=True)
    y = (x - mean) * jax.lax.rsqrt(var + eps)
    return (y * params["gamma"][None, :, None, None]
            + params["beta"][None, :, None, None])


if __name__ == "__main__":
    out_plane = 32
    N, H, W = 2, 16, 16

    key = jax.random.PRNGKey(0)
    kx, kp = jax.random.split(key)
    x = jax.random.normal(kx, (N, 3, H, W), jnp.float32)          # NCHW like PyTorch
    params = scm_init_params(kp, out_plane)

    out = jax.jit(scm_forward_pallas)(x, params)
    out = jax.block_until_ready(out)

    ref = scm_forward_reference(x, params)
    assert out.shape == (N, out_plane, H, W), out.shape
    err = float(jnp.max(jnp.abs(out - ref)))
    # bf16 MXU operands (with f32 accumulation and f32 IN stats) agree with
    # the pure-f32 reference at the ~1e-2 level on IN-normalized outputs.
    assert err < 3e-2, f"max abs err {err}"

    print("KERNEL_OK")
</pallas_src>

<mosaic_0001>
module attributes {stable_mosaic.version = 11 : i64} {
  func.func @_scm_fused_kernel(%arg0: i32, %arg1: memref<1x3x580xf32, #tpu.memory_space<vmem>>, %arg2: memref<8x27xf32, #tpu.memory_space<vmem>>, %arg3: memref<8x1xf32, #tpu.memory_space<vmem>>, %arg4: memref<16x8xbf16, #tpu.memory_space<vmem>>, %arg5: memref<16x1xf32, #tpu.memory_space<vmem>>, %arg6: memref<16x144xbf16, #tpu.memory_space<vmem>>, %arg7: memref<16x1xf32, #tpu.memory_space<vmem>>, %arg8: memref<32x16xbf16, #tpu.memory_space<vmem>>, %arg9: memref<32x1xf32, #tpu.memory_space<vmem>>, %arg10: memref<32x1xf32, #tpu.memory_space<vmem>>, %arg11: memref<32x1xf32, #tpu.memory_space<vmem>>, %arg12: memref<1x324xf32, #tpu.memory_space<vmem>>, %arg13: memref<1x32x324xf32, #tpu.memory_space<vmem>>, %arg14: memref<16x580xbf16, #tpu.memory_space<vmem>>) attributes {dimension_semantics = [#tpu.dimension_semantics<parallel>], iteration_bounds = array<i64: 2>, scalar_prefetch = 0 : i64, scratch_operands = 1 : i64, tpu.core_type = #tpu.core_type<tc>, window_params = [{transform_indices = @transform_0, window_bounds = array<i64: 1, 3, 580>}, {pipeline_mode = #tpu.pipeline_mode<synchronous>, transform_indices = @transform_1, window_bounds = array<i64: 8, 27>}, {pipeline_mode = #tpu.pipeline_mode<synchronous>, transform_indices = @transform_2, window_bounds = array<i64: 8, 1>}, {pipeline_mode = #tpu.pipeline_mode<synchronous>, transform_indices = @transform_3, window_bounds = array<i64: 16, 8>}, {pipeline_mode = #tpu.pipeline_mode<synchronous>, transform_indices = @transform_4, window_bounds = array<i64: 16, 1>}, {pipeline_mode = #tpu.pipeline_mode<synchronous>, transform_indices = @transform_5, window_bounds = array<i64: 16, 144>}, {pipeline_mode = #tpu.pipeline_mode<synchronous>, transform_indices = @transform_6, window_bounds = array<i64: 16, 1>}, {pipeline_mode = #tpu.pipeline_mode<synchronous>, transform_indices = @transform_7, window_bounds = array<i64: 32, 16>}, {pipeline_mode = #tpu.pipeline_mode<synchronous>, transform_indices = @transform_8, window_bounds = array<i64: 32, 1>}, {pipeline_mode = #tpu.pipeline_mode<synchronous>, transform_indices = @transform_9, window_bounds = array<i64: 32, 1>}, {pipeline_mode = #tpu.pipeline_mode<synchronous>, transform_indices = @transform_10, window_bounds = array<i64: 32, 1>}, {pipeline_mode = #tpu.pipeline_mode<synchronous>, transform_indices = @transform_11, window_bounds = array<i64: 1, 324>}, {transform_indices = @transform_12, window_bounds = array<i64: 1, 32, 324>}]} {
    %c0 = arith.constant 0 : index
    %c0_0 = arith.constant 0 : index
    %0 = vector.load %arg12[%c0, %c0_0] : memref<1x324xf32, #tpu.memory_space<vmem>>, vector<1x324xf32>
    %cst = arith.constant 5.000000e-01 : f32
    %1 = vector.broadcast %cst : f32 to vector<1x324xf32>
    %2 = arith.cmpf ogt, %0, %1 : vector<1x324xf32>
    %cst_1 = arith.constant 0.000000e+00 : f32
    %3 = vector.broadcast %cst_1 : f32 to vector<8x324xf32>
    %c0_2 = arith.constant 0 : index
    %c0_3 = arith.constant 0 : index
    %c109 = arith.constant 109 : index
    %4 = vector.load %arg1[%c0_2, %c0_3, %c109] : memref<1x3x580xf32, #tpu.memory_space<vmem>>, vector<1x3x324xf32>
    %5 = vector.shape_cast %4 : vector<1x3x324xf32> to vector<3x324xf32>
    %c0_4 = arith.constant 0 : index
    %c0_5 = arith.constant 0 : index
    %6 = vector.load %arg2[%c0_4, %c0_5] : memref<8x27xf32, #tpu.memory_space<vmem>>, vector<8x1xf32>
    %7 = vector.extract_strided_slice %5 {offsets = [0, 0], sizes = [1, 324], strides = [1, 1]} : vector<3x324xf32> to vector<1x324xf32>
    %8 = vector.broadcast %6 : vector<8x1xf32> to vector<8x324xf32>
    %9 = vector.broadcast %7 : vector<1x324xf32> to vector<8x324xf32>
    %10 = arith.mulf %8, %9 : vector<8x324xf32>
    %11 = arith.addf %3, %10 : vector<8x324xf32>
    %c0_6 = arith.constant 0 : index
    %c1 = arith.constant 1 : index
    %12 = vector.load %arg2[%c0_6, %c1] : memref<8x27xf32, #tpu.memory_space<vmem>>, vector<8x1xf32>
    %13 = vector.extract_strided_slice %5 {offsets = [1, 0], sizes = [1, 324], strides = [1, 1]} : vector<3x324xf32> to vector<1x324xf32>
    %14 = vector.broadcast %12 : vector<8x1xf32> to vector<8x324xf32>
    %15 = vector.broadcast %13 : vector<1x324xf32> to vector<8x324xf32>
    %16 = arith.mulf %14, %15 : vector<8x324xf32>
    %17 = arith.addf %11, %16 : vector<8x324xf32>
    %c0_7 = arith.constant 0 : index
    %c2 = arith.constant 2 : index
    %18 = vector.load %arg2[%c0_7, %c2] : memref<8x27xf32, #tpu.memory_space<vmem>>, vector<8x1xf32>
    %19 = vector.extract_strided_slice %5 {offsets = [2, 0], sizes = [1, 324], strides = [1, 1]} : vector<3x324xf32> to vector<1x324xf32>
    %20 = vector.broadcast %18 : vector<8x1xf32> to vector<8x324xf32>
    %21 = vector.broadcast %19 : vector<1x324xf32> to vector<8x324xf32>
    %22 = arith.mulf %20, %21 : vector<8x324xf32>
    %23 = arith.addf %17, %22 : vector<8x324xf32>
    %c0_8 = arith.constant 0 : index
    %c0_9 = arith.constant 0 : index
    %c110 = arith.constant 110 : index
    %24 = vector.load %arg1[%c0_8, %c0_9, %c110] : memref<1x3x580xf32, #tpu.memory_space<vmem>>, vector<1x3x324xf32>
    %25 = vector.shape_cast %24 : vector<1x3x324xf32> to vector<3x324xf32>
    %c0_10 = arith.constant 0 : index
    %c3 = arith.constant 3 : index
    %26 = vector.load %arg2[%c0_10, %c3] : memref<8x27xf32, #tpu.memory_space<vmem>>, vector<8x1xf32>
    %27 = vector.extract_strided_slice %25 {offsets = [0, 0], sizes = [1, 324], strides = [1, 1]} : vector<3x324xf32> to vector<1x324xf32>
    %28 = vector.broadcast %26 : vector<8x1xf32> to vector<8x324xf32>
    %29 = vector.broadcast %27 : vector<1x324xf32> to vector<8x324xf32>
    %30 = arith.mulf %28, %29 : vector<8x324xf32>
    %31 = arith.addf %23, %30 : vector<8x324xf32>
    %c0_11 = arith.constant 0 : index
    %c4 = arith.constant 4 : index
    %32 = vector.load %arg2[%c0_11, %c4] : memref<8x27xf32, #tpu.memory_space<vmem>>, vector<8x1xf32>
    %33 = vector.extract_strided_slice %25 {offsets = [1, 0], sizes = [1, 324], strides = [1, 1]} : vector<3x324xf32> to vector<1x324xf32>
    %34 = vector.broadcast %32 : vector<8x1xf32> to vector<8x324xf32>
    %35 = vector.broadcast %33 : vector<1x324xf32> to vector<8x324xf32>
    %36 = arith.mulf %34, %35 : vector<8x324xf32>
    %37 = arith.addf %31, %36 : vector<8x324xf32>
    %c0_12 = arith.constant 0 : index
    %c5 = arith.constant 5 : index
    %38 = vector.load %arg2[%c0_12, %c5] : memref<8x27xf32, #tpu.memory_space<vmem>>, vector<8x1xf32>
    %39 = vector.extract_strided_slice %25 {offsets = [2, 0], sizes = [1, 324], strides = [1, 1]} : vector<3x324xf32> to vector<1x324xf32>
    %40 = vector.broadcast %38 : vector<8x1xf32> to vector<8x324xf32>
    %41 = vector.broadcast %39 : vector<1x324xf32> to vector<8x324xf32>
    %42 = arith.mulf %40, %41 : vector<8x324xf32>
    %43 = arith.addf %37, %42 : vector<8x324xf32>
    %c0_13 = arith.constant 0 : index
    %c0_14 = arith.constant 0 : index
    %c111 = arith.constant 111 : index
    %44 = vector.load %arg1[%c0_13, %c0_14, %c111] : memref<1x3x580xf32, #tpu.memory_space<vmem>>, vector<1x3x324xf32>
    %45 = vector.shape_cast %44 : vector<1x3x324xf32> to vector<3x324xf32>
    %c0_15 = arith.constant 0 : index
    %c6 = arith.constant 6 : index
    %46 = vector.load %arg2[%c0_15, %c6] : memref<8x27xf32, #tpu.memory_space<vmem>>, vector<8x1xf32>
    %47 = vector.extract_strided_slice %45 {offsets = [0, 0], sizes = [1, 324], strides = [1, 1]} : vector<3x324xf32> to vector<1x324xf32>
    %48 = vector.broadcast %46 : vector<8x1xf32> to vector<8x324xf32>
    %49 = vector.broadcast %47 : vector<1x324xf32> to vector<8x324xf32>
    %50 = arith.mulf %48, %49 : vector<8x324xf32>
    %51 = arith.addf %43, %50 : vector<8x324xf32>
    %c0_16 = arith.constant 0 : index
    %c7 = arith.constant 7 : index
    %52 = vector.load %arg2[%c0_16, %c7] : memref<8x27xf32, #tpu.memory_space<vmem>>, vector<8x1xf32>
    %53 = vector.extract_strided_slice %45 {offsets = [1, 0], sizes = [1, 324], strides = [1, 1]} : vector<3x324xf32> to vector<1x324xf32>
    %54 = vector.broadcast %52 : vector<8x1xf32> to vector<8x324xf32>
    %55 = vector.broadcast %53 : vector<1x324xf32> to vector<8x324xf32>
    %56 = arith.mulf %54, %55 : vector<8x324xf32>
    %57 = arith.addf %51, %56 : vector<8x324xf32>
    %c0_17 = arith.constant 0 : index
    %c8 = arith.constant 8 : index
    %58 = vector.load %arg2[%c0_17, %c8] : memref<8x27xf32, #tpu.memory_space<vmem>>, vector<8x1xf32>
    %59 = vector.extract_strided_slice %45 {offsets = [2, 0], sizes = [1, 324], strides = [1, 1]} : vector<3x324xf32> to vector<1x324xf32>
    %60 = vector.broadcast %58 : vector<8x1xf32> to vector<8x324xf32>
    %61 = vector.broadcast %59 : vector<1x324xf32> to vector<8x324xf32>
    %62 = arith.mulf %60, %61 : vector<8x324xf32>
    %63 = arith.addf %57, %62 : vector<8x324xf32>
    %c0_18 = arith.constant 0 : index
    %c0_19 = arith.constant 0 : index
    %c127 = arith.constant 127 : index
    %64 = vector.load %arg1[%c0_18, %c0_19, %c127] : memref<1x3x580xf32, #tpu.memory_space<vmem>>, vector<1x3x324xf32>
    %65 = vector.shape_cast %64 : vector<1x3x324xf32> to vector<3x324xf32>
    %c0_20 = arith.constant 0 : index
    %c9 = arith.constant 9 : index
    %66 = vector.load %arg2[%c0_20, %c9] : memref<8x27xf32, #tpu.memory_space<vmem>>, vector<8x1xf32>
    %67 = vector.extract_strided_slice %65 {offsets = [0, 0], sizes = [1, 324], strides = [1, 1]} : vector<3x324xf32> to vector<1x324xf32>
    %68 = vector.broadcast %66 : vector<8x1xf32> to vector<8x324xf32>
    %69 = vector.broadcast %67 : vector<1x324xf32> to vector<8x324xf32>
    %70 = arith.mulf %68, %69 : vector<8x324xf32>
    %71 = arith.addf %63, %70 : vector<8x324xf32>
    %c0_21 = arith.constant 0 : index
    %c10 = arith.constant 10 : index
    %72 = vector.load %arg2[%c0_21, %c10] : memref<8x27xf32, #tpu.memory_space<vmem>>, vector<8x1xf32>
    %73 = vector.extract_strided_slice %65 {offsets = [1, 0], sizes = [1, 324], strides = [1, 1]} : vector<3x324xf32> to vector<1x324xf32>
    %74 = vector.broadcast %72 : vector<8x1xf32> to vector<8x324xf32>
    %75 = vector.broadcast %73 : vector<1x324xf32> to vector<8x324xf32>
    %76 = arith.mulf %74, %75 : vector<8x324xf32>
    %77 = arith.addf %71, %76 : vector<8x324xf32>
    %c0_22 = arith.constant 0 : index
    %c11 = arith.constant 11 : index
    %78 = vector.load %arg2[%c0_22, %c11] : memref<8x27xf32, #tpu.memory_space<vmem>>, vector<8x1xf32>
    %79 = vector.extract_strided_slice %65 {offsets = [2, 0], sizes = [1, 324], strides = [1, 1]} : vector<3x324xf32> to vector<1x324xf32>
    %80 = vector.broadcast %78 : vector<8x1xf32> to vector<8x324xf32>
    %81 = vector.broadcast %79 : vector<1x324xf32> to vector<8x324xf32>
    %82 = arith.mulf %80, %81 : vector<8x324xf32>
    %83 = arith.addf %77, %82 : vector<8x324xf32>
    %c0_23 = arith.constant 0 : index
    %c0_24 = arith.constant 0 : index
    %c128 = arith.constant 128 : index
    %84 = vector.load %arg1[%c0_23, %c0_24, %c128] : memref<1x3x580xf32, #tpu.memory_space<vmem>>, vector<1x3x324xf32>
    %85 = vector.shape_cast %84 : vector<1x3x324xf32> to vector<3x324xf32>
    %c0_25 = arith.constant 0 : index
    %c12 = arith.constant 12 : index
    %86 = vector.load %arg2[%c0_25, %c12] : memref<8x27xf32, #tpu.memory_space<vmem>>, vector<8x1xf32>
    %87 = vector.extract_strided_slice %85 {offsets = [0, 0], sizes = [1, 324], strides = [1, 1]} : vector<3x324xf32> to vector<1x324xf32>
    %88 = vector.broadcast %86 : vector<8x1xf32> to vector<8x324xf32>
    %89 = vector.broadcast %87 : vector<1x324xf32> to vector<8x324xf32>
    %90 = arith.mulf %88, %89 : vector<8x324xf32>
    %91 = arith.addf %83, %90 : vector<8x324xf32>
    %c0_26 = arith.constant 0 : index
    %c13 = arith.constant 13 : index
    %92 = vector.load %arg2[%c0_26, %c13] : memref<8x27xf32, #tpu.memory_space<vmem>>, vector<8x1xf32>
    %93 = vector.extract_strided_slice %85 {offsets = [1, 0], sizes = [1, 324], strides = [1, 1]} : vector<3x324xf32> to vector<1x324xf32>
    %94 = vector.broadcast %92 : vector<8x1xf32> to vector<8x324xf32>
    %95 = vector.broadcast %93 : vector<1x324xf32> to vector<8x324xf32>
    %96 = arith.mulf %94, %95 : vector<8x324xf32>
    %97 = arith.addf %91, %96 : vector<8x324xf32>
    %c0_27 = arith.constant 0 : index
    %c14 = arith.constant 14 : index
    %98 = vector.load %arg2[%c0_27, %c14] : memref<8x27xf32, #tpu.memory_space<vmem>>, vector<8x1xf32>
    %99 = vector.extract_strided_slice %85 {offsets = [2, 0], sizes = [1, 324], strides = [1, 1]} : vector<3x324xf32> to vector<1x324xf32>
    %100 = vector.broadcast %98 : vector<8x1xf32> to vector<8x324xf32>
    %101 = vector.broadcast %99 : vector<1x324xf32> to vector<8x324xf32>
    %102 = arith.mulf %100, %101 : vector<8x324xf32>
    %103 = arith.addf %97, %102 : vector<8x324xf32>
    %c0_28 = arith.constant 0 : index
    %c0_29 = arith.constant 0 : index
    %c129 = arith.constant 129 : index
    %104 = vector.load %arg1[%c0_28, %c0_29, %c129] : memref<1x3x580xf32, #tpu.memory_space<vmem>>, vector<1x3x324xf32>
    %105 = vector.shape_cast %104 : vector<1x3x324xf32> to vector<3x324xf32>
    %c0_30 = arith.constant 0 : index
    %c15 = arith.constant 15 : index
    %106 = vector.load %arg2[%c0_30, %c15] : memref<8x27xf32, #tpu.memory_space<vmem>>, vector<8x1xf32>
    %107 = vector.extract_strided_slice %105 {offsets = [0, 0], sizes = [1, 324], strides = [1, 1]} : vector<3x324xf32> to vector<1x324xf32>
    %108 = vector.broadcast %106 : vector<8x1xf32> to vector<8x324xf32>
    %109 = vector.broadcast %107 : vector<1x324xf32> to vector<8x324xf32>
    %110 = arith.mulf %108, %109 : vector<8x324xf32>
    %111 = arith.addf %103, %110 : vector<8x324xf32>
    %c0_31 = arith.constant 0 : index
    %c16 = arith.constant 16 : index
    %112 = vector.load %arg2[%c0_31, %c16] : memref<8x27xf32, #tpu.memory_space<vmem>>, vector<8x1xf32>
    %113 = vector.extract_strided_slice %105 {offsets = [1, 0], sizes = [1, 324], strides = [1, 1]} : vector<3x324xf32> to vector<1x324xf32>
    %114 = vector.broadcast %112 : vector<8x1xf32> to vector<8x324xf32>
    %115 = vector.broadcast %113 : vector<1x324xf32> to vector<8x324xf32>
    %116 = arith.mulf %114, %115 : vector<8x324xf32>
    %117 = arith.addf %111, %116 : vector<8x324xf32>
    %c0_32 = arith.constant 0 : index
    %c17 = arith.constant 17 : index
    %118 = vector.load %arg2[%c0_32, %c17] : memref<8x27xf32, #tpu.memory_space<vmem>>, vector<8x1xf32>
    %119 = vector.extract_strided_slice %105 {offsets = [2, 0], sizes = [1, 324], strides = [1, 1]} : vector<3x324xf32> to vector<1x324xf32>
    %120 = vector.broadcast %118 : vector<8x1xf32> to vector<8x324xf32>
    %121 = vector.broadcast %119 : vector<1x324xf32> to vector<8x324xf32>
    %122 = arith.mulf %120, %121 : vector<8x324xf32>
    %123 = arith.addf %117, %122 : vector<8x324xf32>
    %c0_33 = arith.constant 0 : index
    %c0_34 = arith.constant 0 : index
    %c145 = arith.constant 145 : index
    %124 = vector.load %arg1[%c0_33, %c0_34, %c145] : memref<1x3x580xf32, #tpu.memory_space<vmem>>, vector<1x3x324xf32>
    %125 = vector.shape_cast %124 : vector<1x3x324xf32> to vector<3x324xf32>
    %c0_35 = arith.constant 0 : index
    %c18 = arith.constant 18 : index
    %126 = vector.load %arg2[%c0_35, %c18] : memref<8x27xf32, #tpu.memory_space<vmem>>, vector<8x1xf32>
    %127 = vector.extract_strided_slice %125 {offsets = [0, 0], sizes = [1, 324], strides = [1, 1]} : vector<3x324xf32> to vector<1x324xf32>
    %128 = vector.broadcast %126 : vector<8x1xf32> to vector<8x324xf32>
    %129 = vector.broadcast %127 : vector<1x324xf32> to vector<8x324xf32>
    %130 = arith.mulf %128, %129 : vector<8x324xf32>
    %131 = arith.addf %123, %130 : vector<8x324xf32>
    %c0_36 = arith.constant 0 : index
    %c19 = arith.constant 19 : index
    %132 = vector.load %arg2[%c0_36, %c19] : memref<8x27xf32, #tpu.memory_space<vmem>>, vector<8x1xf32>
    %133 = vector.extract_strided_slice %125 {offsets = [1, 0], sizes = [1, 324], strides = [1, 1]} : vector<3x324xf32> to vector<1x324xf32>
    %134 = vector.broadcast %132 : vector<8x1xf32> to vector<8x324xf32>
    %135 = vector.broadcast %133 : vector<1x324xf32> to vector<8x324xf32>
    %136 = arith.mulf %134, %135 : vector<8x324xf32>
    %137 = arith.addf %131, %136 : vector<8x324xf32>
    %c0_37 = arith.constant 0 : index
    %c20 = arith.constant 20 : index
    %138 = vector.load %arg2[%c0_37, %c20] : memref<8x27xf32, #tpu.memory_space<vmem>>, vector<8x1xf32>
    %139 = vector.extract_strided_slice %125 {offsets = [2, 0], sizes = [1, 324], strides = [1, 1]} : vector<3x324xf32> to vector<1x324xf32>
    %140 = vector.broadcast %138 : vector<8x1xf32> to vector<8x324xf32>
    %141 = vector.broadcast %139 : vector<1x324xf32> to vector<8x324xf32>
    %142 = arith.mulf %140, %141 : vector<8x324xf32>
    %143 = arith.addf %137, %142 : vector<8x324xf32>
    %c0_38 = arith.constant 0 : index
    %c0_39 = arith.constant 0 : index
    %c146 = arith.constant 146 : index
    %144 = vector.load %arg1[%c0_38, %c0_39, %c146] : memref<1x3x580xf32, #tpu.memory_space<vmem>>, vector<1x3x324xf32>
    %145 = vector.shape_cast %144 : vector<1x3x324xf32> to vector<3x324xf32>
    %c0_40 = arith.constant 0 : index
    %c21 = arith.constant 21 : index
    %146 = vector.load %arg2[%c0_40, %c21] : memref<8x27xf32, #tpu.memory_space<vmem>>, vector<8x1xf32>
    %147 = vector.extract_strided_slice %145 {offsets = [0, 0], sizes = [1, 324], strides = [1, 1]} : vector<3x324xf32> to vector<1x324xf32>
    %148 = vector.broadcast %146 : vector<8x1xf32> to vector<8x324xf32>
    %149 = vector.broadcast %147 : vector<1x324xf32> to vector<8x324xf32>
    %150 = arith.mulf %148, %149 : vector<8x324xf32>
    %151 = arith.addf %143, %150 : vector<8x324xf32>
    %c0_41 = arith.constant 0 : index
    %c22 = arith.constant 22 : index
    %152 = vector.load %arg2[%c0_41, %c22] : memref<8x27xf32, #tpu.memory_space<vmem>>, vector<8x1xf32>
    %153 = vector.extract_strided_slice %145 {offsets = [1, 0], sizes = [1, 324], strides = [1, 1]} : vector<3x324xf32> to vector<1x324xf32>
    %154 = vector.broadcast %152 : vector<8x1xf32> to vector<8x324xf32>
    %155 = vector.broadcast %153 : vector<1x324xf32> to vector<8x324xf32>
    %156 = arith.mulf %154, %155 : vector<8x324xf32>
    %157 = arith.addf %151, %156 : vector<8x324xf32>
    %c0_42 = arith.constant 0 : index
    %c23 = arith.constant 23 : index
    %158 = vector.load %arg2[%c0_42, %c23] : memref<8x27xf32, #tpu.memory_space<vmem>>, vector<8x1xf32>
    %159 = vector.extract_strided_slice %145 {offsets = [2, 0], sizes = [1, 324], strides = [1, 1]} : vector<3x324xf32> to vector<1x324xf32>
    %160 = vector.broadcast %158 : vector<8x1xf32> to vector<8x324xf32>
    %161 = vector.broadcast %159 : vector<1x324xf32> to vector<8x324xf32>
    %162 = arith.mulf %160, %161 : vector<8x324xf32>
    %163 = arith.addf %157, %162 : vector<8x324xf32>
    %c0_43 = arith.constant 0 : index
    %c0_44 = arith.constant 0 : index
    %c147 = arith.constant 147 : index
    %164 = vector.load %arg1[%c0_43, %c0_44, %c147] : memref<1x3x580xf32, #tpu.memory_space<vmem>>, vector<1x3x324xf32>
    %165 = vector.shape_cast %164 : vector<1x3x324xf32> to vector<3x324xf32>
    %c0_45 = arith.constant 0 : index
    %c24 = arith.constant 24 : index
    %166 = vector.load %arg2[%c0_45, %c24] : memref<8x27xf32, #tpu.memory_space<vmem>>, vector<8x1xf32>
    %167 = vector.extract_strided_slice %165 {offsets = [0, 0], sizes = [1, 324], strides = [1, 1]} : vector<3x324xf32> to vector<1x324xf32>
    %168 = vector.broadcast %166 : vector<8x1xf32> to vector<8x324xf32>
    %169 = vector.broadcast %167 : vector<1x324xf32> to vector<8x324xf32>
    %170 = arith.mulf %168, %169 : vector<8x324xf32>
    %171 = arith.addf %163, %170 : vector<8x324xf32>
    %c0_46 = arith.constant 0 : index
    %c25 = arith.constant 25 : index
    %172 = vector.load %arg2[%c0_46, %c25] : memref<8x27xf32, #tpu.memory_space<vmem>>, vector<8x1xf32>
    %173 = vector.extract_strided_slice %165 {offsets = [1, 0], sizes = [1, 324], strides = [1, 1]} : vector<3x324xf32> to vector<1x324xf32>
    %174 = vector.broadcast %172 : vector<8x1xf32> to vector<8x324xf32>
    %175 = vector.broadcast %173 : vector<1x324xf32> to vector<8x324xf32>
    %176 = arith.mulf %174, %175 : vector<8x324xf32>
    %177 = arith.addf %171, %176 : vector<8x324xf32>
    %c0_47 = arith.constant 0 : index
    %c26 = arith.constant 26 : index
    %178 = vector.load %arg2[%c0_47, %c26] : memref<8x27xf32, #tpu.memory_space<vmem>>, vector<8x1xf32>
    %179 = vector.extract_strided_slice %165 {offsets = [2, 0], sizes = [1, 324], strides = [1, 1]} : vector<3x324xf32> to vector<1x324xf32>
    %180 = vector.broadcast %178 : vector<8x1xf32> to vector<8x324xf32>
    %181 = vector.broadcast %179 : vector<1x324xf32> to vector<8x324xf32>
    %182 = arith.mulf %180, %181 : vector<8x324xf32>
    %183 = arith.addf %177, %182 : vector<8x324xf32>
    %c0_48 = arith.constant 0 : index
    %c0_49 = arith.constant 0 : index
    %184 = vector.load %arg3[%c0_48, %c0_49] : memref<8x1xf32, #tpu.memory_space<vmem>>, vector<8x1xf32>
    %185 = vector.broadcast %184 : vector<8x1xf32> to vector<8x324xf32>
    %186 = arith.addf %183, %185 : vector<8x324xf32>
    %cst_50 = arith.constant 0.000000e+00 : f32
    %187 = vector.broadcast %cst_50 : f32 to vector<8x324xf32>
    %188 = arith.maximumf %186, %187 : vector<8x324xf32>
    %c0_51 = arith.constant 0 : index
    %c0_52 = arith.constant 0 : index
    %189 = vector.load %arg4[%c0_51, %c0_52] : memref<16x8xbf16, #tpu.memory_space<vmem>>, vector<16x8xbf16>
    %190 = arith.truncf %188 : vector<8x324xf32> to vector<8x324xbf16>
    %cst_53 = arith.constant dense<0.000000e+00> : vector<16x324xf32>
    %191 = tpu.matmul %189, %190, %cst_53 {dimension_numbers = #tpu.dot_dimension_numbers<[1], [0], [0], [1], [0, 0, 1, 1], [], []>} : vector<16x8xbf16>, vector<8x324xbf16>, vector<16x324xf32> -> vector<16x324xf32>
    %c0_54 = arith.constant 0 : index
    %c0_55 = arith.constant 0 : index
    %192 = vector.load %arg5[%c0_54, %c0_55] : memref<16x1xf32, #tpu.memory_space<vmem>>, vector<16x1xf32>
    %193 = vector.broadcast %192 : vector<16x1xf32> to vector<16x324xf32>
    %194 = arith.addf %191, %193 : vector<16x324xf32>
    %cst_56 = arith.constant 0.000000e+00 : f32
    %195 = vector.broadcast %cst_56 : f32 to vector<16x324xf32>
    %196 = arith.maximumf %194, %195 : vector<16x324xf32>
    %cst_57 = arith.constant 0.000000e+00 : f32
    %197 = vector.shape_cast %2 : vector<1x324xi1> to vector<1x324xi1>
    %198 = vector.broadcast %197 : vector<1x324xi1> to vector<16x324xi1>
    %199 = vector.broadcast %cst_57 : f32 to vector<16x324xf32>
    %200 = arith.select %198, %196, %199 : vector<16x324xi1>, vector<16x324xf32>
    %201 = arith.truncf %200 : vector<16x324xf32> to vector<16x324xbf16>
    %c0_58 = arith.constant 0 : index
    %c128_59 = arith.constant 128 : index
    %202 = vector.load %arg14[%c0_58, %c128_59] : memref<16x580xbf16, #tpu.memory_space<vmem>>, vector<16x324xbf16>
    tpu.vector_store %arg14[%c0_58, %c128_59], %201 {strides = array<i32>} : memref<16x580xbf16, #tpu.memory_space<vmem>>, vector<16x324xbf16>,
    %c0_60 = arith.constant 0 : index
    %c109_61 = arith.constant 109 : index
    %203 = vector.load %arg14[%c0_60, %c109_61] : memref<16x580xbf16, #tpu.memory_space<vmem>>, vector<16x324xbf16>
    %c0_62 = arith.constant 0 : index
    %c110_63 = arith.constant 110 : index
    %204 = vector.load %arg14[%c0_62, %c110_63] : memref<16x580xbf16, #tpu.memory_space<vmem>>, vector<16x324xbf16>
    %c0_64 = arith.constant 0 : index
    %c111_65 = arith.constant 111 : index
    %205 = vector.load %arg14[%c0_64, %c111_65] : memref<16x580xbf16, #tpu.memory_space<vmem>>, vector<16x324xbf16>
    %c0_66 = arith.constant 0 : index
    %c127_67 = arith.constant 127 : index
    %206 = vector.load %arg14[%c0_66, %c127_67] : memref<16x580xbf16, #tpu.memory_space<vmem>>, vector<16x324xbf16>
    %c0_68 = arith.constant 0 : index
    %c128_69 = arith.constant 128 : index
    %207 = vector.load %arg14[%c0_68, %c128_69] : memref<16x580xbf16, #tpu.memory_space<vmem>>, vector<16x324xbf16>
    %c0_70 = arith.constant 0 : index
    %c129_71 = arith.constant 129 : index
    %208 = vector.load %arg14[%c0_70, %c129_71] : memref<16x580xbf16, #tpu.memory_space<vmem>>, vector<16x324xbf16>
    %c0_72 = arith.constant 0 : index
    %c145_73 = arith.constant 145 : index
    %209 = vector.load %arg14[%c0_72, %c145_73] : memref<16x580xbf16, #tpu.memory_space<vmem>>, vector<16x324xbf16>
    %c0_74 = arith.constant 0 : index
    %c146_75 = arith.constant 146 : index
    %210 = vector.load %arg14[%c0_74, %c146_75] : memref<16x580xbf16, #tpu.memory_space<vmem>>, vector<16x324xbf16>
    %c0_76 = arith.constant 0 : index
    %c147_77 = arith.constant 147 : index
    %211 = vector.load %arg14[%c0_76, %c147_77] : memref<16x580xbf16, #tpu.memory_space<vmem>>, vector<16x324xbf16>
    %212 = tpu.concatenate %203, %204, %205, %206, %207, %208, %209, %210, %211 in 0 : vector<16x324xbf16>, vector<16x324xbf16>, vector<16x324xbf16>, vector<16x324xbf16>, vector<16x324xbf16>, vector<16x324xbf16>, vector<16x324xbf16>, vector<16x324xbf16>, vector<16x324xbf16> -> vector<144x324xbf16>
    %c0_78 = arith.constant 0 : index
    %c0_79 = arith.constant 0 : index
    %213 = vector.load %arg6[%c0_78, %c0_79] : memref<16x144xbf16, #tpu.memory_space<vmem>>, vector<16x144xbf16>
    %cst_80 = arith.constant dense<0.000000e+00> : vector<16x324xf32>
    %214 = tpu.matmul %213, %212, %cst_80 {dimension_numbers = #tpu.dot_dimension_numbers<[1], [0], [0], [1], [0, 0, 1, 1], [], []>} : vector<16x144xbf16>, vector<144x324xbf16>, vector<16x324xf32> -> vector<16x324xf32>
    %c0_81 = arith.constant 0 : index
    %c0_82 = arith.constant 0 : index
    %215 = vector.load %arg7[%c0_81, %c0_82] : memref<16x1xf32, #tpu.memory_space<vmem>>, vector<16x1xf32>
    %216 = vector.broadcast %215 : vector<16x1xf32> to vector<16x324xf32>
    %217 = arith.addf %214, %216 : vector<16x324xf32>
    %cst_83 = arith.constant 0.000000e+00 : f32
    %218 = vector.broadcast %cst_83 : f32 to vector<16x324xf32>
    %219 = arith.maximumf %217, %218 : vector<16x324xf32>
    %c0_84 = arith.constant 0 : index
    %c0_85 = arith.constant 0 : index
    %220 = vector.load %arg8[%c0_84, %c0_85] : memref<32x16xbf16, #tpu.memory_space<vmem>>, vector<32x16xbf16>
    %221 = arith.truncf %219 : vector<16x324xf32> to vector<16x324xbf16>
    %cst_86 = arith.constant dense<0.000000e+00> : vector<32x324xf32>
    %222 = tpu.matmul %220, %221, %cst_86 {dimension_numbers = #tpu.dot_dimension_numbers<[1], [0], [0], [1], [0, 0, 1, 1], [], []>} : vector<32x16xbf16>, vector<16x324xbf16>, vector<32x324xf32> -> vector<32x324xf32>
    %c0_87 = arith.constant 0 : index
    %c0_88 = arith.constant 0 : index
    %223 = vector.load %arg9[%c0_87, %c0_88] : memref<32x1xf32, #tpu.memory_space<vmem>>, vector<32x1xf32>
    %224 = vector.broadcast %223 : vector<32x1xf32> to vector<32x324xf32>
    %225 = arith.addf %222, %224 : vector<32x324xf32>
    %cst_89 = arith.constant 0.000000e+00 : f32
    %226 = vector.shape_cast %2 : vector<1x324xi1> to vector<1x324xi1>
    %227 = vector.broadcast %226 : vector<1x324xi1> to vector<32x324xi1>
    %228 = vector.broadcast %cst_89 : f32 to vector<32x324xf32>
    %229 = arith.select %227, %225, %228 : vector<32x324xi1>, vector<32x324xf32>
    %cst_90 = arith.constant dense<0.000000e+00> : vector<32xf32>
    %230 = vector.multi_reduction <add>, %229, %cst_90 [1] : vector<32x324xf32> to vector<32xf32>
    %231 = vector.shape_cast %230 : vector<32xf32> to vector<32x1xf32>
    %cst_91 = arith.constant 3.906250e-03 : f32
    %232 = vector.broadcast %cst_91 : f32 to vector<32x1xf32>
    %233 = arith.mulf %231, %232 : vector<32x1xf32>
    %234 = vector.broadcast %233 : vector<32x1xf32> to vector<32x324xf32>
    %235 = arith.subf %225, %234 : vector<32x324xf32>
    %cst_92 = arith.constant 0.000000e+00 : f32
    %236 = vector.shape_cast %2 : vector<1x324xi1> to vector<1x324xi1>
    %237 = vector.broadcast %236 : vector<1x324xi1> to vector<32x324xi1>
    %238 = vector.broadcast %cst_92 : f32 to vector<32x324xf32>
    %239 = arith.select %237, %235, %238 : vector<32x324xi1>, vector<32x324xf32>
    %240 = arith.mulf %239, %239 : vector<32x324xf32>
    %cst_93 = arith.constant dense<0.000000e+00> : vector<32xf32>
    %241 = vector.multi_reduction <add>, %240, %cst_93 [1] : vector<32x324xf32> to vector<32xf32>
    %242 = vector.shape_cast %241 : vector<32xf32> to vector<32x1xf32>
    %cst_94 = arith.constant 3.906250e-03 : f32
    %243 = vector.broadcast %cst_94 : f32 to vector<32x1xf32>
    %244 = arith.mulf %242, %243 : vector<32x1xf32>
    %245 = vector.broadcast %233 : vector<32x1xf32> to vector<32x324xf32>
    %246 = arith.subf %225, %245 : vector<32x324xf32>
    %cst_95 = arith.constant 9.99999974E-6 : f32
    %247 = vector.broadcast %cst_95 : f32 to vector<32x1xf32>
    %248 = arith.addf %244, %247 : vector<32x1xf32>
    %249 = math.rsqrt %248 : vector<32x1xf32>
    %250 = vector.broadcast %249 : vector<32x1xf32> to vector<32x324xf32>
    %251 = arith.mulf %246, %250 : vector<32x324xf32>
    %c0_96 = arith.constant 0 : index
    %c0_97 = arith.constant 0 : index
    %252 = vector.load %arg10[%c0_96, %c0_97] : memref<32x1xf32, #tpu.memory_space<vmem>>, vector<32x1xf32>
    %253 = vector.broadcast %252 : vector<32x1xf32> to vector<32x324xf32>
    %254 = arith.mulf %251, %253 : vector<32x324xf32>
    %c0_98 = arith.constant 0 : index
    %c0_99 = arith.constant 0 : index
    %255 = vector.load %arg11[%c0_98, %c0_99] : memref<32x1xf32, #tpu.memory_space<vmem>>, vector<32x1xf32>
    %256 = vector.broadcast %255 : vector<32x1xf32> to vector<32x324xf32>
    %257 = arith.addf %254, %256 : vector<32x324xf32>
    %c0_100 = arith.constant 0 : index
    %c0_101 = arith.constant 0 : index
    %c0_102 = arith.constant 0 : index
    %258 = vector.load %arg13[%c0_100, %c0_101, %c0_102] : memref<1x32x324xf32, #tpu.memory_space<vmem>>, vector<1x32x324xf32>
    %259 = vector.shape_cast %258 : vector<1x32x324xf32> to vector<32x324xf32>
    %260 = vector.shape_cast %257 : vector<32x324xf32> to vector<1x32x324xf32>
    tpu.vector_store %arg13[%c0_100, %c0_101, %c0_102], %260 {strides = array<i32>} : memref<1x32x324xf32, #tpu.memory_space<vmem>>, vector<1x32x324xf32>,
    return
  }
  func.func @transform_0(%arg0: i32) -> (i32, i32, i32) {
    %c0_i32 = arith.constant 0 : i32
    %c0_i32_0 = arith.constant 0 : i32
    %c0_i32_1 = arith.constant 0 : i32
    return %arg0, %c0_i32, %c0_i32_0 : i32, i32, i32
  }
  func.func @transform_1(%arg0: i32) -> (i32, i32) {
    %c0_i32 = arith.constant 0 : i32
    %c0_i32_0 = arith.constant 0 : i32
    %c0_i32_1 = arith.constant 0 : i32
    return %c0_i32, %c0_i32_0 : i32, i32
  }
  func.func @transform_2(%arg0: i32) -> (i32, i32) {
    %c0_i32 = arith.constant 0 : i32
    %c0_i32_0 = arith.constant 0 : i32
    %c0_i32_1 = arith.constant 0 : i32
    return %c0_i32, %c0_i32_0 : i32, i32
  }
  func.func @transform_3(%arg0: i32) -> (i32, i32) {
    %c0_i32 = arith.constant 0 : i32
    %c0_i32_0 = arith.constant 0 : i32
    %c0_i32_1 = arith.constant 0 : i32
    return %c0_i32, %c0_i32_0 : i32, i32
  }
  func.func @transform_4(%arg0: i32) -> (i32, i32) {
    %c0_i32 = arith.constant 0 : i32
    %c0_i32_0 = arith.constant 0 : i32
    %c0_i32_1 = arith.constant 0 : i32
    return %c0_i32, %c0_i32_0 : i32, i32
  }
  func.func @transform_5(%arg0: i32) -> (i32, i32) {
    %c0_i32 = arith.constant 0 : i32
    %c0_i32_0 = arith.constant 0 : i32
    %c0_i32_1 = arith.constant 0 : i32
    return %c0_i32, %c0_i32_0 : i32, i32
  }
  func.func @transform_6(%arg0: i32) -> (i32, i32) {
    %c0_i32 = arith.constant 0 : i32
    %c0_i32_0 = arith.constant 0 : i32
    %c0_i32_1 = arith.constant 0 : i32
    return %c0_i32, %c0_i32_0 : i32, i32
  }
  func.func @transform_7(%arg0: i32) -> (i32, i32) {
    %c0_i32 = arith.constant 0 : i32
    %c0_i32_0 = arith.constant 0 : i32
    %c0_i32_1 = arith.constant 0 : i32
    return %c0_i32, %c0_i32_0 : i32, i32
  }
  func.func @transform_8(%arg0: i32) -> (i32, i32) {
    %c0_i32 = arith.constant 0 : i32
    %c0_i32_0 = arith.constant 0 : i32
    %c0_i32_1 = arith.constant 0 : i32
    return %c0_i32, %c0_i32_0 : i32, i32
  }
  func.func @transform_9(%arg0: i32) -> (i32, i32) {
    %c0_i32 = arith.constant 0 : i32
    %c0_i32_0 = arith.constant 0 : i32
    %c0_i32_1 = arith.constant 0 : i32
    return %c0_i32, %c0_i32_0 : i32, i32
  }
  func.func @transform_10(%arg0: i32) -> (i32, i32) {
    %c0_i32 = arith.constant 0 : i32
    %c0_i32_0 = arith.constant 0 : i32
    %c0_i32_1 = arith.constant 0 : i32
    return %c0_i32, %c0_i32_0 : i32, i32
  }
  func.func @transform_11(%arg0: i32) -> (i32, i32) {
    %c0_i32 = arith.constant 0 : i32
    %c0_i32_0 = arith.constant 0 : i32
    %c0_i32_1 = arith.constant 0 : i32
    return %c0_i32, %c0_i32_0 : i32, i32
  }
  func.func @transform_12(%arg0: i32) -> (i32, i32, i32) {
    %c0_i32 = arith.constant 0 : i32
    %c0_i32_0 = arith.constant 0 : i32
    %c0_i32_1 = arith.constant 0 : i32
    return %arg0, %c0_i32, %c0_i32_0 : i32, i32, i32
  }
}

</mosaic_0001>

<bundles_post_ra>
// kernel: scm_forward_pallas.1
= control target key start
LH: loop header
LB: loop body
LE: loop exit
PB: predicated region body
PF: predicated region fallthrough
CT: control target
= control target key end

     0   :  { %s2493_s21 = smov 0   ;;  %s3655_s0 = inlined_call_operand.vmem [shape: f32[2,3,580], index: 0, kind: input, shape index: {}]   ;;  %s3656_s1 = inlined_call_operand.vmem [shape: f32[8,27], index: 1, kind: input, shape index: {}]   ;;  %s3657_s2 = inlined_call_operand.vmem [shape: f32[8,1], index: 2, kind: input, shape index: {}]   ;;  %s3658_s3 = inlined_call_operand.vmem [shape: bf16[16,8], index: 3, kind: input, shape index: {}]   ;;  %s3659_s4 = inlined_call_operand.vmem [shape: f32[16,1], index: 4, kind: input, shape index: {}]   ;;  %s3660_s5 = inlined_call_operand.vmem [shape: bf16[16,144], index: 5, kind: input, shape index: {}]   ;;  %s3661_s6 = inlined_call_operand.vmem [shape: f32[16,1], index: 6, kind: input, shape index: {}]   ;;  %s3662_s7 = inlined_call_operand.vmem [shape: bf16[32,16], index: 7, kind: input, shape index: {}]   ;;  %s3663_s8 = inlined_call_operand.vmem [shape: f32[32,1], index: 8, kind: input, shape index: {}]   ;;  %s3664_s9 = inlined_call_operand.vmem [shape: f32[32,1], index: 9, kind: input, shape index: {}]   ;;  %s3665_s10 = inlined_call_operand.vmem [shape: f32[32,1], index: 10, kind: input, shape index: {}]   ;;  %s3666_s11 = inlined_call_operand.vmem [shape: f32[1,324], index: 11, kind: input, shape index: {}]   ;;  %s3667_s12 = inlined_call_operand.vmem [shape: f32[2,32,324], index: 12, kind: output, shape index: {}]  }
   0x1 LB: > { %s2251_s22 = sadd.s32 4294967295, %s2388_s21   ;;  %p2255_p0 = scmp.ge.s32.totalorder %s2388_s21, 1  ;;  %s2388_s21 = sphi %s2493_s21, %s22_s21  }
   0x2   : > { %p362_p1 = scmp.lt.s32.totalorder %s2388_s21, 3 }
   0x4   : > { %p363_p2 = pnand %p2255_p0, %p362_p1 }
   0x6   : > { %366 = sbr.rel (%p363_p2) target bundleno = 1883 (0x75b), region = 68 }
   0xd   : > { %v2504_v0 = vld [vmem:[%s3656_s1] sm:$0xff]  ;;  %v2390_v1 = vmov 3   ;;  %v2391_v2 = vmov 5   ;;  %v2392_v3 = vmov 4   ;;  %v2393_v4 = vmov 6   ;;  %p404_p3 = scmp.lt.s32.totalorder %s2251_s22, 1 }
   0xe   : > { %2339 = vset.pattern.permute.xlu0 %v2390_v1  ;;  %2341 = vset.pattern.permute.xlu1 %v2391_v2  ;;  %v3668_v5 = vmov 0   ;;  %v2395_v6 = vmov 7   ;;  %v2396_v7 = vmov 8   ;;  %v2397_v8 = vmov 9   ;;  %s2417_s29 = smov 127   ;;  %s2418_s30 = smov 126  }
   0xf   : > { %568 = vperm.xlu0 %2339, %v2504_v0   ;;  %631 = vperm.xlu1 %2341, %v2504_v0   ;;  %v2398_v9 = vmov 11   ;;  %v2399_v10 = vmov 10   ;;  %v2400_v11 = vmov 14   ;;  %v2401_v12 = vmov 12   ;;  %s3732_s22 = smov (!%p404_p3, %s2251_s22), 1  ;;  %s2419_s13 = smov 110  }
  0x10   : > { %1428 = vmatprep.mubr.bf16.mxu0 %v3668_v5  ;;  %v2402_v13 = vmov 17   ;;  %v2403_v14 = vmov 13   ;;  %v2404_v15 = vmov 20   ;;  %v2405_v16 = vmov 15   ;;  %s2291_s25 = smul.u32 20, %s3732_s22  ;;  %s2420_s14 = smov 109  }
  0x11   : > { %v2406_v17 = vmov 23   ;;  %v2407_v18 = vmov 16   ;;  %v2408_v19 = vmov 26   ;;  %v2409_v20 = vmov 18   ;;  %s2421_s15 = smov 108   ;;  %s2422_s16 = smov 92  }
  0x12   : > { %v2410_v21 = vmov 2   ;;  %v2411_v22 = vmov 19   ;;  %v2412_v23 = vmov 21   ;;  %v427_v24 = vlaneseq  ;;  %s2542_s28 = scalar_lea.vmem %s3655_s0, %s2291_s25  ;;  %s2423_s17 = smov 91  }
  0x13   : > { %2340 = vset.pattern.permute.xlu0 %v2392_v3  ;;  %2342 = vset.pattern.permute.xlu1 %v2393_v4  ;;  %v2413_v25 = vmov 22   ;;  %v2414_v27 = vmov 24   ;;  %v2547_v29 = vld [vmem:[%s2542_s28 + $0x4] sm:$0x77]  ;;  %v2415_v31 = vmov 25   ;;  %v2416_v34 = vmov 1  }
  0x14   : > { %600 = vperm.xlu0 %2340, %v2504_v0   ;;  %662 = vperm.xlu1 %2342, %v2504_v0   ;;  %v428_v26 = vshrl.u32 %v427_v24, 7  ;;  %v418_v36 = vld [vmem:[%s2542_s28 + $0x8] sm:$0x77]  ;;  %v417_v37 = vld [vmem:[%s2542_s28] sm:$0x77]  ;;  %s2424_s18 = smov 90  }
  0x15   : > { %vm587_vm0 = vcmask 1039360   ;;  %vm681_vm1 = vcmask 1031168   ;;  %vm775_vm2 = vcmask 900096   ;;  %vm896_vm3 = vcmask 891904   ;;  %s2427_s23 = smov 19  }
  0x16   : > { %v2544_v28 = vsub.s32 4, %v428_v26  ;;  %v2552_v32 = vsub.s32 5, %v428_v26  ;;  %v2560_v35 = vsub.s32 0, %v428_v26  ;;  %v2566_v40 = vsub.s32 1, %v428_v26 }
  0x17   : > { %v2577_v47 = vsub.s32 2, %v428_v26  ;;  %v2604_v61 = vsub.s32 6, %v428_v26  ;;  %vm1029_vm4 = vcmask 883712   ;;  %vm1108_vm5 = vcmask 752640  }
  0x18   : > { %2343 = vset.pattern.permute.xlu1 %v2395_v6  ;;  %2344 = vset.pattern.permute.xlu0 %v2396_v7  ;;  %v864_v30 = vrot.slane %v2547_v29, %v2544_v28  ;;  %v918_v33 = vrot.slane %v2547_v29, %v2552_v32  ;;  %3688 = vst [vmem:[#allocation3_spill] sm:$0xff] %v2560_v35  ;;  %3689 = vst [vmem:[#allocation4_spill] sm:$0xff] %v2566_v40  ;;  %vm1187_vm6 = vcmask 744448   ;;  %vm1266_vm7 = vcmask 736256  }
  0x19   : > { %694 = vperm.xlu1 %2343, %v2504_v0   ;;  %725 = vperm.xlu0 %2344, %v2504_v0   ;;  %v438_v38 = vrot.slane %v418_v36, %v2560_v35  ;;  %v430_v39 = vrot.slane %v417_v37, %v2560_v35  ;;  %v434_v43 = vrot.slane %v417_v37, %v2544_v28  ;;  %vm2426_vm8 = vmmov 0  }
  0x1a   : > { %v478_v44 = vrot.slane %v417_v37, %v2566_v40  ;;  %v486_v46 = vrot.slane %v418_v36, %v2566_v40  ;;  %3690 = vst [vmem:[#allocation5_spill] sm:$0xff] %v2577_v47  ;;  %v442_v51 = vrot.slane %v418_v36, %v2544_v28  ;;  %v482_v53 = vrot.slane %v417_v37, %v2552_v32 }
  0x1b   : > { %v2569_v41 = vrot.slane %v438_v38, %v2560_v35  ;;  %v2572_v42 = vrot.slane %v430_v39, %v2560_v35  ;;  %v2582_v50 = vrot.slane %v434_v43, %v2560_v35  ;;  %v526_v55 = vrot.slane %v417_v37, %v2577_v47 }
  0x1c   : > { %v2586_v52 = vrot.slane %v478_v44, %v2566_v40  ;;  %v2592_v54 = vrot.slane %v486_v46, %v2566_v40  ;;  %v2597_v58 = vrot.slane %v442_v51, %v2560_v35  ;;  %v2602_v60 = vrot.slane %v482_v53, %v2566_v40 }
  0x1d   : > { %2345 = vset.pattern.permute.xlu1 %v2397_v8  ;;  %2347 = vset.pattern.permute.xlu0 %v2398_v9  ;;  %v2609_v63 = vrot.slane %v526_v55, %v2577_v47  ;;  %v490_v3 = vrot.slane %v418_v36, %v2552_v32  ;;  %v530_v6 = vrot.slane %v417_v37, %v2604_v61  ;;  %vm1378_vm9 = vcmask 154624  }
  0x1e   : > { %756 = vperm.xlu1 %2345, %v2504_v0   ;;  %819 = vperm.xlu0 %2347, %v2504_v0   ;;  %vm1386_vm10 = vcmask 1043456   ;;  %vm1382_vm11 = vcmask 64512  }
  0x1f   : > { %v2623_v9 = vrot.slane %v490_v3, %v2566_v40 }
  0x22   : > { %2346 = vset.pattern.permute.xlu1 %v2399_v10  ;;  %2350 = vset.pattern.permute.xlu0 %v2400_v11  ;;  %v2627_v10 = vrot.slane %v530_v6, %v2577_v47 }
  0x23   : > { %788 = vperm.xlu1 %2346, %v2504_v0   ;;  %961 = vperm.xlu0 %2350, %v2504_v0  }
  0x27   : > { %2348 = vset.pattern.permute.xlu1 %v2401_v12  ;;  %2353 = vset.pattern.permute.xlu0 %v2402_v13 }
  0x28   : > { %852 = vperm.xlu1 %2348, %v2504_v0   ;;  %1067 = vperm.xlu0 %2353, %v2504_v0  }
  0x2c   : > { %2349 = vset.pattern.permute.xlu1 %v2403_v14  ;;  %2356 = vset.pattern.permute.xlu0 %v2404_v15  ;;  %v538_v14 = vrot.slane %v418_v36, %v2604_v61 }
  0x2d   : > { %908 = vperm.xlu1 %2349, %v2504_v0   ;;  %1146 = vperm.xlu0 %2356, %v2504_v0  }
  0x31   : > { %2351 = vset.pattern.permute.xlu1 %v2405_v16  ;;  %2359 = vset.pattern.permute.xlu0 %v2406_v17  ;;  %v2638_v17 = vrot.slane %v538_v14, %v2577_v47  ;;  %v2710_v14 = vrot.slane %v918_v33, %v2566_v40 }
  0x32   : > { %1014 = vperm.xlu1 %2351, %v2504_v0   ;;  %1225 = vperm.xlu0 %2359, %v2504_v0  }
  0x36   : > { %2352 = vset.pattern.permute.xlu1 %v2407_v18  ;;  %2362 = vset.pattern.permute.xlu0 %v2408_v19 }
  0x37   : > { %1041 = vperm.xlu1 %2352, %v2504_v0   ;;  %1304 = vperm.xlu0 %2362, %v2504_v0  }
  0x3b   : > { %2354 = vset.pattern.permute.xlu1 %v2409_v20  ;;  %2365 = vset.pattern.permute.xlu0 %v2410_v21 }
  0x3c   : > { %1093 = vperm.xlu1 %2354, %v2504_v0   ;;  %520 = vperm.xlu0 %2365, %v2504_v0  }
  0x40   : > { %2355 = vset.pattern.permute.xlu1 %v2411_v22  ;;  %2367 = vset.pattern.permute.xlu0 %v3668_v5 }
  0x41   : > { %1120 = vperm.xlu1 %2355, %v2504_v0  }
  0x45   : > { %2357 = vset.pattern.permute.xlu1 %v2412_v23 }
  0x46   : > { %1172 = vperm.xlu1 %2357, %v2504_v0  }
  0x4a   : > { %2358 = vset.pattern.permute.xlu1 %v2413_v25 }
  0x4b   : > { %1199 = vperm.xlu1 %2358, %v2504_v0  }
  0x4f   : > { %2360 = vset.pattern.permute.xlu1 %v2414_v27 }
  0x50   : > { %1251 = vperm.xlu1 %2360, %v2504_v0  }
  0x54   : > { %2361 = vset.pattern.permute.xlu1 %v2415_v31 }
  0x55   : > { %1278 = vperm.xlu1 %2361, %v2504_v0  }
  0x59   : > { %2363 = vset.pattern.permute.xlu1 %v3668_v5 }
  0x5a   : > { %422 = vperm.xlu1 %2363, %v2504_v0  }
  0x5e   : > { %2364 = vset.pattern.permute.xlu1 %v2416_v34 }
  0x5f   : > { %472 = vperm.xlu1 %2364, %v2504_v0   ;;  %v534_v0 = vrot.slane %v418_v36, %v2577_v47 }
  0x61   : > { %v2620_v8 = vrot.slane %v534_v0, %v2577_v47  ;;  %v850_v0 = vld [vmem:[%s2542_s28 + $0xc] sm:$0x7] }
  0x62   : > { %v868_v6 = vrot.slane %v850_v0, %v2560_v35  ;;  %v975_v28 = vrot.slane %v850_v0, %v2577_v47 }
  0x63   : > { %2366 = vset.pattern.permute.xlu1 %v3668_v5 }
  0x8e   : > { %v569_v45 = vpop.permute.xlu0 %568  ;;  %v632_v2 = vpop.permute.xlu1 %631 }
  0x8f   : > { %v573_v48 = vmul.f32 %v569_v45, %v2569_v41  ;;  %v571_v49 = vmul.f32 %v569_v45, %v2572_v42  ;;  %v572_v57 = vmul.f32 %v569_v45, %v2582_v50  ;;  %v574_v1 = vmul.f32 %v569_v45, %v2597_v58 }
  0x90   : > { %v634_v7 = vmul.f32 %v632_v2, %v2609_v63  ;;  %v636_v11 = vmul.f32 %v632_v2, %v2620_v8  ;;  %v635_v15 = vmul.f32 %v632_v2, %v2627_v10  ;;  %v637_v19 = vmul.f32 %v632_v2, %v2638_v17 }
  0x91   : > { %583 = vrot.lane.b32.xlu0 %v573_v48, %s2417_s29  ;;  %579 = vrot.lane.b32.xlu1 %v571_v49, %s2417_s29 }
  0x93   : > { %v601_v56 = vpop.permute.xlu0 %600  ;;  %v663_v13 = vpop.permute.xlu1 %662 }
  0x94   : > { %v603_v59 = vmul.f32 %v601_v56, %v2586_v52  ;;  %v605_v62 = vmul.f32 %v601_v56, %v2592_v54  ;;  %v604_v4 = vmul.f32 %v601_v56, %v2602_v60  ;;  %v606_v12 = vmul.f32 %v601_v56, %v2623_v9 }
  0x95   : > { %581 = vrot.lane.b32.xlu1 %v572_v57, %s2417_s29  ;;  %v665_v16 = vmul.f32 %v663_v13, %v2572_v42  ;;  %v667_v18 = vmul.f32 %v663_v13, %v2569_v41  ;;  %v666_v21 = vmul.f32 %v663_v13, %v2582_v50  ;;  %v668_v24 = vmul.f32 %v663_v13, %v2597_v58 }
  0x96   : > { %611 = vrot.lane.b32.xlu0 %v603_v59, %s2417_s29  ;;  %v2702_v13 = vrot.slane %v868_v6, %v2560_v35 }
  0x98   : > { %v695_v20 = vpop.permute.xlu1 %694  ;;  %v726_v25 = vpop.permute.xlu0 %725 }
  0x99   : > { %585 = vrot.lane.b32.xlu1 %v574_v1, %s2417_s29  ;;  %v697_v22 = vmul.f32 %v695_v20, %v2586_v52  ;;  %v699_v23 = vmul.f32 %v695_v20, %v2592_v54  ;;  %v698_v26 = vmul.f32 %v695_v20, %v2602_v60  ;;  %v728_v27 = vmul.f32 %v726_v25, %v2609_v63 }
  0x9a   : > { %615 = vrot.lane.b32.xlu0 %v605_v62, %s2417_s29  ;;  %v730_v34 = vmul.f32 %v726_v25, %v2620_v8  ;;  %v700_v36 = vmul.f32 %v695_v20, %v2623_v9  ;;  %v729_v38 = vmul.f32 %v726_v25, %v2627_v10  ;;  %v731_v45 = vmul.f32 %v726_v25, %v2638_v17 }
  0x9b   : > { %v860_v62 = vrot.slane %v2547_v29, %v2560_v35  ;;  %v971_v25 = vrot.slane %v2547_v29, %v2604_v61 }
  0x9d   : > { %613 = vrot.lane.b32.xlu1 %v604_v4, %s2417_s29  ;;  %v757_v31 = vpop.permute.xlu1 %756  ;;  %v820_v55 = vpop.permute.xlu0 %819  ;;  %v2691_v3 = vrot.slane %v860_v62, %v2560_v35 }
  0x9e   : > { %642 = vrot.lane.b32.xlu0 %v634_v7, %s2417_s29  ;;  %v759_v39 = vmul.f32 %v757_v31, %v2572_v42  ;;  %v761_v44 = vmul.f32 %v757_v31, %v2569_v41  ;;  %v760_v46 = vmul.f32 %v757_v31, %v2582_v50  ;;  %v762_v53 = vmul.f32 %v757_v31, %v2597_v58 }
  0x9f   : > { %v822_v59 = vmul.f32 %v820_v55, %v2609_v63  ;;  %v824_v2 = vmul.f32 %v820_v55, %v2620_v8  ;;  %v823_v7 = vmul.f32 %v820_v55, %v2627_v10 }
  0xa1   : > { %617 = vrot.lane.b32.xlu1 %v606_v12, %s2417_s29 }
  0xa2   : > { %646 = vrot.lane.b32.xlu0 %v636_v11, %s2417_s29  ;;  %v789_v37 = vpop.permute.xlu1 %788 }
  0xa3   : > { %v791_v49 = vmul.f32 %v789_v37, %v2586_v52  ;;  %v793_v51 = vmul.f32 %v789_v37, %v2592_v54  ;;  %v792_v57 = vmul.f32 %v789_v37, %v2602_v60  ;;  %v794_v4 = vmul.f32 %v789_v37, %v2623_v9 }
  0xa4   : > { %v2754_v37 = vrot.slane %v971_v25, %v2577_v47 }
  0xa5   : > { %644 = vrot.lane.b32.xlu1 %v635_v15, %s2417_s29  ;;  %v967_v15 = vrot.slane %v2547_v29, %v2577_v47 }
  0xa6   : > { %673 = vrot.lane.b32.xlu0 %v665_v16, %s2418_s30  ;;  %v825_v16 = vmul.f32 %v820_v55, %v2638_v17 }
  0xa7   : > { %v853_v43 = vpop.permute.xlu1 %852 }
  0xa8   : > { %v884_v11 = vmul.f32 %v2691_v3, %v853_v43  ;;  %v886_v20 = vmul.f32 %v2702_v13, %v853_v43 }
  0xa9   : > { %648 = vrot.lane.b32.xlu1 %v637_v19, %s2417_s29  ;;  %v914_v19 = vrot.slane %v2547_v29, %v2566_v40 }
  0xaa   : > { %677 = vrot.lane.b32.xlu0 %v667_v18, %s2418_s30  ;;  %v2719_v18 = vrot.slane %v864_v30, %v2560_v35 }
  0xac   : > { %v909_v48 = vpop.permute.xlu1 %908  ;;  %v885_v30 = vmul.f32 %v2719_v18, %v853_v43 }
  0xad   : > { %675 = vrot.lane.b32.xlu1 %v666_v21, %s2418_s30  ;;  %v939_v33 = vmul.f32 %v2710_v14, %v909_v48  ;;  %v2730_v21 = vrot.slane %v967_v15, %v2577_v47 }
  0xae   : > { %705 = vrot.lane.b32.xlu0 %v697_v22, %s2418_s30  ;;  %v962_v22 = vpop.permute.xlu0 %961 }
  0xb1   : > { %679 = vrot.lane.b32.xlu1 %v668_v24, %s2418_s30  ;;  %v2676_v56 = vpop.permute.xlu1 %1014  ;;  %v922_v24 = vrot.slane %v850_v0, %v2566_v40 }
  0xb2   : > { %709 = vrot.lane.b32.xlu0 %v699_v23, %s2418_s30  ;;  %v2735_v23 = vrot.slane %v914_v19, %v2566_v40  ;;  %v1068_v43 = vpop.permute.xlu0 %1067 }
  0xb4   : > { %v938_v31 = vmul.f32 %v2735_v23, %v909_v48 }
  0xb5   : > { %707 = vrot.lane.b32.xlu1 %v698_v26, %s2418_s30  ;;  %v991_v26 = vmul.f32 %v2730_v21, %v962_v22 }
  0xb6   : > { %736 = vrot.lane.b32.xlu0 %v728_v27, %s2418_s30  ;;  %v2686_v1 = vpop.permute.xlu1 %1041  ;;  %v2744_v27 = vrot.slane %v975_v28, %v2577_v47 }
  0xb7   : > { %v1045_v62 = vmul.f32 %v2686_v1, %v2710_v14 }
  0xb8   : > { %v993_v29 = vmul.f32 %v2744_v27, %v962_v22 }
  0xb9   : > { %711 = vrot.lane.b32.xlu1 %v700_v36, %s2418_s30 }
  0xba   : > { %740 = vrot.lane.b32.xlu0 %v730_v34, %s2418_s30  ;;  %v2748_v34 = vrot.slane %v922_v24, %v2566_v40 }
  0xbb   : > { %v2699_v12 = vpop.permute.xlu1 %1093 }
  0xbc   : > { %v940_v61 = vmul.f32 %v2748_v34, %v909_v48  ;;  %v1147_v48 = vpop.permute.xlu0 %1146  ;;  %v1098_v6 = vmul.f32 %v2699_v12, %v2702_v13  ;;  %v1097_v15 = vmul.f32 %v2699_v12, %v2719_v18 }
  0xbd   : > { %738 = vrot.lane.b32.xlu1 %v729_v38, %s2418_s30  ;;  %v992_v38 = vmul.f32 %v2754_v37, %v962_v22  ;;  %v1149_v28 = vmul.f32 %v1147_v48, %v2730_v21  ;;  %v1151_v24 = vmul.f32 %v1147_v48, %v2744_v27 }
  0xbe   : > { %767 = vrot.lane.b32.xlu0 %v759_v39, %s2419_s13 }
  0xc0   : > { %v2725_v32 = vpop.permute.xlu1 %1120 }
  0xc1   : > { %742 = vrot.lane.b32.xlu1 %v731_v45, %s2418_s30  ;;  %v1017_v45 = vmul.f32 %v2676_v56, %v2691_v3 }
  0xc2   : > { %771 = vrot.lane.b32.xlu0 %v761_v44, %s2419_s13  ;;  %v1018_v44 = vmul.f32 %v2676_v56, %v2719_v18 }
  0xc5   : > { %769 = vrot.lane.b32.xlu1 %v760_v46, %s2419_s13  ;;  %v2750_v36 = vpop.permute.xlu1 %1172 }
  0xc6   : > { %799 = vrot.lane.b32.xlu0 %v791_v49, %s2419_s13  ;;  %v1044_v49 = vmul.f32 %v2686_v1, %v2735_v23 }
  0xc9   : > { %773 = vrot.lane.b32.xlu1 %v762_v53, %s2419_s13  ;;  %v1046_v53 = vmul.f32 %v2686_v1, %v2748_v34  ;;  %v1072_v1 = vmul.f32 %v1068_v43, %v2744_v27 }
  0xca   : > { %803 = vrot.lane.b32.xlu0 %v793_v51, %s2419_s13  ;;  %v2761_v39 = vpop.permute.xlu1 %1199  ;;  %v1019_v51 = vmul.f32 %v2676_v56, %v2702_v13  ;;  %v1070_v56 = vmul.f32 %v1068_v43, %v2730_v21 }
  0xcd   : > { %801 = vrot.lane.b32.xlu1 %v792_v57, %s2419_s13  ;;  %v2783_v57 = vpop.permute.xlu0 %1225 }
  0xce   : > { %830 = vrot.lane.b32.xlu0 %v822_v59, %s2419_s13  ;;  %v1071_v59 = vmul.f32 %v1068_v43, %v2754_v37  ;;  %v1202_v43 = vmul.f32 %v2761_v39, %v2735_v23 }
  0xcf   : > { %v2770_v46 = vpop.permute.xlu1 %1251 }
  0xd1   : > { %805 = vrot.lane.b32.xlu1 %v794_v4, %s2419_s13  ;;  %v1096_v4 = vmul.f32 %v2699_v12, %v2691_v3 }
  0xd2   : > { %834 = vrot.lane.b32.xlu0 %v824_v2, %s2419_s13  ;;  %v2794_v2 = vpop.permute.xlu0 %1304 }
  0xd4   : > { %v2781_v55 = vpop.permute.xlu1 %1278 }
  0xd5   : > { %832 = vrot.lane.b32.xlu1 %v823_v7, %s2419_s13 }
  0xd6   : > { %890 = vrot.lane.b32.xlu0 %v884_v11, %s2420_s14  ;;  %v2806_v11 = vpop.permute.xlu0 %520 }
  0xd9   : > { %836 = vrot.lane.b32.xlu1 %v825_v16, %s2419_s13  ;;  %v2792_v0 = vpop.permute.xlu1 %422  ;;  %v1124_v16 = vmul.f32 %v2725_v32, %v2710_v14 }
  0xda   : > { %894 = vrot.lane.b32.xlu0 %v886_v20, %s2420_s14 }
  0xdd   : > { %892 = vrot.lane.b32.xlu1 %v885_v30, %s2420_s14  ;;  %v1125_v30 = vmul.f32 %v2725_v32, %v2748_v34 }
  0xde   : > { %946 = vrot.lane.b32.xlu0 %v939_v33, %s2420_s14  ;;  %v2804_v7 = vpop.permute.xlu1 %472  ;;  %v1123_v33 = vmul.f32 %v2725_v32, %v2735_v23  ;;  %v1175_v32 = vmul.f32 %v2750_v36, %v2691_v3 }
  0xe1   : > { %944 = vrot.lane.b32.xlu1 %v938_v31, %s2420_s14 }
  0xe2   : > { %997 = vrot.lane.b32.xlu0 %v991_v26, %s2420_s14  ;;  %v1150_v26 = vmul.f32 %v1147_v48, %v2754_v37 }
  0xe5   : > { %948 = vrot.lane.b32.xlu1 %v940_v61, %s2420_s14 }
  0xe6   : > { %1001 = vrot.lane.b32.xlu0 %v993_v29, %s2420_s14  ;;  %v1176_v29 = vmul.f32 %v2750_v36, %v2719_v18 }
  0xe9   : > { %999 = vrot.lane.b32.xlu1 %v992_v38, %s2420_s14 }
  0xea   : > { %1025 = vrot.lane.b32.xlu0 %v1018_v44, %s2421_s15  ;;  %v1177_v44 = vmul.f32 %v2750_v36, %v2702_v13  ;;  %v1229_v36 = vmul.f32 %v2783_v57, %v2754_v37 }
  0xed   : > { %1023 = vrot.lane.b32.xlu1 %v1017_v45, %s2421_s15 }
  0xee   : > { %1050 = vrot.lane.b32.xlu0 %v1044_v49, %s2421_s15  ;;  %v1204_v49 = vmul.f32 %v2761_v39, %v2748_v34 }
  0xf1   : > { %1027 = vrot.lane.b32.xlu1 %v1019_v51, %s2421_s15  ;;  %v1203_v51 = vmul.f32 %v2761_v39, %v2710_v14  ;;  %v1254_v39 = vmul.f32 %v2770_v46, %v2691_v3  ;;  %v1255_v3 = vmul.f32 %v2770_v46, %v2719_v18  ;;  %v1283_v18 = vmul.f32 %v2781_v55, %v2748_v34 }
  0xf2   : > { %1054 = vrot.lane.b32.xlu0 %v1046_v53, %s2421_s15  ;;  %v1307_v34 = vmul.f32 %v2794_v2, %v2730_v21 }
  0xf5   : > { %1052 = vrot.lane.b32.xlu1 %v1045_v62, %s2421_s15  ;;  %v1228_v62 = vmul.f32 %v2783_v57, %v2730_v21 }
  0xf6   : > { %1078 = vrot.lane.b32.xlu0 %v1071_v59, %s2421_s15 }
  0xf9   : > { %1076 = vrot.lane.b32.xlu1 %v1070_v56, %s2421_s15 }
  0xfa   : > { %1102 = vrot.lane.b32.xlu0 %v1096_v4, %s2422_s16 }
  0xfd   : > { %1080 = vrot.lane.b32.xlu1 %v1072_v1, %s2421_s15  ;;  %v1230_v1 = vmul.f32 %v2783_v57, %v2744_v27  ;;  %v1281_v57 = vmul.f32 %v2781_v55, %v2735_v23  ;;  %v1282_v23 = vmul.f32 %v2781_v55, %v2710_v14  ;;  %v1309_v14 = vmul.f32 %v2794_v2, %v2744_v27 }
  0xfe   : > { %1106 = vrot.lane.b32.xlu0 %v1098_v6, %s2422_s16 }
 0x101   : > { %1104 = vrot.lane.b32.xlu1 %v1097_v15, %s2422_s16 }
 0x102   : > { %1131 = vrot.lane.b32.xlu0 %v1124_v16, %s2422_s16  ;;  %v1256_v16 = vmul.f32 %v2770_v46, %v2702_v13  ;;  %v1329_v13 = vld [vmem:[%s3657_s2] sm:$0xff] }
 0x103   : > { %v2815_v19 = vpop.permute.xlu0 %583  ;;  %v2817_v20 = vpop.permute.xlu1 %579 }
 0x105   : > { %1129 = vrot.lane.b32.xlu1 %v1123_v33, %s2422_s16 }
 0x106   : > { %1155 = vrot.lane.b32.xlu0 %v1149_v28, %s2422_s16 }
 0x107   : > { %v2824_v12 = vpop.permute.xlu1 %581 }
 0x108   : > { %v2828_v22 = vpop.permute.xlu0 %611 }
 0x109   : > { %1133 = vrot.lane.b32.xlu1 %v1125_v30, %s2422_s16 }
 0x10a   : > { %1159 = vrot.lane.b32.xlu0 %v1151_v24, %s2422_s16 }
 0x10b   : > { %v2833_v25 = vpop.permute.xlu1 %585 }
 0x10c   : > { %v2836_v31 = vpop.permute.xlu0 %615 }
 0x10d   : > { %1157 = vrot.lane.b32.xlu1 %v1150_v26, %s2422_s16  ;;  %v1308_v26 = vmul.f32 %v2794_v2, %v2754_v37 }
 0x10e   : > { %1183 = vrot.lane.b32.xlu0 %v1176_v29, %s2423_s17 }
 0x10f   : > { %v2844_v61 = vpop.permute.xlu1 %613 }
 0x110   : > { %v2846_v38 = vpop.permute.xlu0 %642 }
 0x111   : > { %1181 = vrot.lane.b32.xlu1 %v1175_v32, %s2423_s17 }
 0x112   : > { %1208 = vrot.lane.b32.xlu0 %v1202_v43, %s2423_s17 }
 0x113   : > { %v2854_v45 = vpop.permute.xlu1 %617 }
 0x114   : > { %v2856_v48 = vpop.permute.xlu0 %646 }
 0x115   : > { %1185 = vrot.lane.b32.xlu1 %v1177_v44, %s2423_s17 }
 0x116   : > { %1212 = vrot.lane.b32.xlu0 %v1204_v49, %s2423_s17 }
 0x117   : > { %v2864_v53 = vpop.permute.xlu1 %644 }
 0x118   : > { %v2866_v59 = vpop.permute.xlu0 %673 }
 0x119   : > { %1210 = vrot.lane.b32.xlu1 %v1203_v51, %s2423_s17 }
 0x11a   : > { %1236 = vrot.lane.b32.xlu0 %v1229_v36, %s2423_s17 }
 0x11b   : > { %v2874_v56 = vpop.permute.xlu1 %648 }
 0x11c   : > { %v2876_v4 = vpop.permute.xlu0 %677 }
 0x11d   : > { %1234 = vrot.lane.b32.xlu1 %v1228_v62, %s2423_s17 }
 0x11e   : > { %1260 = vrot.lane.b32.xlu0 %v1254_v39, %s2424_s18 }
 0x11f   : > { %v2884_v6 = vpop.permute.xlu1 %675 }
 0x120   : > { %v2886_v15 = vpop.permute.xlu0 %705 }
 0x121   : > { %1238 = vrot.lane.b32.xlu1 %v1230_v1, %s2423_s17 }
 0x122   : > { %1264 = vrot.lane.b32.xlu0 %v1256_v16, %s2424_s18 }
 0x123   : > { %v2894_v33 = vpop.permute.xlu1 %679 }
 0x124   : > { %v2896_v28 = vpop.permute.xlu0 %709 }
 0x125   : > { %1262 = vrot.lane.b32.xlu1 %v1255_v3, %s2424_s18 }
 0x126   : > { %1287 = vrot.lane.b32.xlu0 %v1281_v57, %s2424_s18 }
 0x127   : > { %v2905_v30 = vpop.permute.xlu1 %707 }
 0x128   : > { %v2907_v24 = vpop.permute.xlu0 %736 }
 0x129   : > { %1332 = vperm.xlu1 %2366, %v1329_v13  }
 0x12a   : > { %1291 = vrot.lane.b32.xlu0 %v1283_v18, %s2424_s18 }
 0x12b   : > { %v2914_v46 = vpop.permute.xlu1 %711 }
 0x12c   : > { %v2918_v29 = vpop.permute.xlu0 %740 }
 0x12d   : > { %1289 = vrot.lane.b32.xlu1 %v1282_v23, %s2424_s18 }
 0x12e   : > { %1315 = vrot.lane.b32.xlu0 %v1308_v26, %s2424_s18 }
 0x12f   : > { %v2924_v32 = vpop.permute.xlu1 %738 }
 0x130   : > { %v2926_v43 = vpop.permute.xlu0 %767 }
 0x131   : > { %1313 = vrot.lane.b32.xlu1 %v1307_v34, %s2424_s18 }
 0x133   : > { %v2931_v55 = vpop.permute.xlu1 %742 }
 0x134   : > { %v2933_v37 = vpop.permute.xlu0 %771 }
 0x135   : > { %1317 = vrot.lane.b32.xlu1 %v1309_v14, %s2424_s18 }
 0x137   : > { %v2936_v44 = vpop.permute.xlu1 %769 }
 0x138   : > { %v2938_v49 = vpop.permute.xlu0 %799 }
 0x13b   : > { %v2940_v21 = vpop.permute.xlu1 %773 }
 0x13c   : > { %v2942_v51 = vpop.permute.xlu0 %803 }
 0x13f   : > { %v2944_v36 = vpop.permute.xlu1 %801 }
 0x140   : > { %v2946_v62 = vpop.permute.xlu0 %830 }
 0x143   : > { %v2948_v39 = vpop.permute.xlu1 %805 }
 0x144   : > { %v2950_v27 = vpop.permute.xlu0 %834 }
 0x145   : > { %3691 = vst [vmem:[#allocation6_spill] sm:$0xff] %v2950_v27 }
 0x147   : > { %v2952_v2 = vpop.permute.xlu1 %832 }
 0x148   : > { %v2954_v1 = vpop.permute.xlu0 %890 }
 0x14b   : > { %v2956_v16 = vpop.permute.xlu1 %836 }
 0x14c   : > { %v2958_v3 = vpop.permute.xlu0 %894 }
 0x14f   : > { %v2960_v57 = vpop.permute.xlu1 %892 }
 0x150   : > { %3692 = vst [vmem:[#allocation7_spill] sm:$0xff] %v2960_v57  ;;  %v2962_v13 = vpop.permute.xlu0 %946 }
 0x151   : > { %3693 = vst [vmem:[#allocation8_spill] sm:$0xff] %v2962_v13 }
 0x153   : > { %v2964_v18 = vpop.permute.xlu1 %944 }
 0x154   : > { %v2966_v23 = vpop.permute.xlu0 %997 }
 0x155   : > { %3694 = vst [vmem:[#allocation9_spill] sm:$0xff] %v2966_v23  ;;  %v463_v23 = vmul.f32 %v2572_v42, %v2792_v0 }
 0x157   : > { %v2968_v26 = vpop.permute.xlu1 %948 }
 0x158   : > { %v2970_v34 = vpop.permute.xlu0 %1001 }
 0x159   : > { %3695 = vst [vmem:[#allocation10_spill] sm:$0xff] %v2970_v34 }
 0x15b   : > { %v2972_v14 = vpop.permute.xlu1 %999 }
 0x15c   : > { %3696 = vst [vmem:[#allocation11_spill] sm:$0xff] %v2972_v14  ;;  %v2974_v5 = vpop.permute.xlu0 %1025  ;;  %v511_v14 = vmul.f32 %v2586_v52, %v2804_v7  ;;  %v562_v52 = vmul.f32 %v2638_v17, %v2806_v11 }
 0x15d   : > { %3697 = vst [vmem:[#allocation12_spill] sm:$0xff] %v2974_v5  ;;  %v466_v5 = vmul.f32 %v2597_v58, %v2792_v0  ;;  %v588_v58 = vsel %vm587_vm0, %v2817_v20, %v2824_v12  ;;  %v464_v20 = vmul.f32 %v2582_v50, %v2792_v0  ;;  %v465_v50 = vmul.f32 %v2569_v41, %v2792_v0 }
 0x15f   : > { %v2976_v47 = vpop.permute.xlu1 %1023 }
 0x160   : > { %3698 = vst [vmem:[#allocation13_spill] sm:$0xff] %v2976_v47  ;;  %v2978_v35 = vpop.permute.xlu0 %1050 }
 0x161   : > { %3699 = vst [vmem:[#allocation14_spill] sm:$0xff] %v2978_v35  ;;  %v514_v35 = vmul.f32 %v2623_v9, %v2804_v7 }
 0x163   : > { %v2980_v40 = vpop.permute.xlu1 %1027  ;;  %v518_v42 = vadd.f32 %v514_v35, %v466_v5  ;;  %v650_v35 = vsel %vm587_vm0, %v2846_v38, %v2864_v53 }
 0x164   : > { %3700 = vst [vmem:[#allocation15_spill] sm:$0xff] %v2980_v40  ;;  %v2982_v57 = vpop.permute.xlu0 %1054 }
 0x165   : > { %3701 = vst [vmem:[#allocation16_spill] sm:$0xff] %v2982_v57 }
 0x167   : > { %v2984_v13 = vpop.permute.xlu1 %1052 }
 0x168   : > { %3702 = vst [vmem:[#allocation17_spill] sm:$0xff] %v2984_v13  ;;  %v2986_v27 = vpop.permute.xlu0 %1078  ;;  %v559_v13 = vmul.f32 %v2609_v63, %v2806_v11  ;;  %v619_v63 = vsel %vm587_vm0, %v2828_v22, %v2844_v61 }
 0x169   : > { %3703 = vst [vmem:[#allocation18_spill] sm:$0xff] %v2986_v27  ;;  %v515_v27 = vadd.f32 %v511_v14, %v463_v23 }
 0x16b   : > { %v2992_v34 = vpop.permute.xlu1 %1076  ;;  %v563_v47 = vadd.f32 %v559_v13, %v515_v27  ;;  %v512_v13 = vmul.f32 %v2602_v60, %v2804_v7  ;;  %v560_v60 = vmul.f32 %v2627_v10, %v2806_v11  ;;  %v776_v10 = vsel %vm775_vm2, %v2926_v43, %v2936_v44 }
 0x16c   : > { %3704 = vst [vmem:[#allocation19_spill] sm:$0xff] %v2992_v34  ;;  %v2998_v40 = vpop.permute.xlu0 %1102  ;;  %v589_v43 = vsel %vm587_vm0, %v2824_v12, %v2815_v19  ;;  %v590_v12 = vsel %vm587_vm0, %v2815_v19, %v2833_v25  ;;  %v683_v19 = vsel %vm681_vm1, %v2884_v6, %v2876_v4 }
 0x16d   : > { %3705 = vst [vmem:[#allocation20_spill] sm:$0xff] %v2998_v40  ;;  %v566_v40 = vadd.f32 %v562_v52, %v518_v42  ;;  %v595_v5 = vadd.f32 %v588_v58, %v563_v47  ;;  %v682_v47 = vsel %vm681_vm1, %v2866_v59, %v2884_v6  ;;  %v713_v52 = vsel %vm681_vm1, %v2886_v15, %v2905_v30 }
 0x16e   : > { %v513_v59 = vmul.f32 %v2592_v54, %v2804_v7  ;;  %v744_v15 = vsel %vm681_vm1, %v2907_v24, %v2924_v32  ;;  %v807_v24 = vsel %vm775_vm2, %v2938_v49, %v2944_v36  ;;  %v745_v6 = vsel %vm681_vm1, %v2924_v32, %v2918_v29 }
 0x16f   : > { %v3002_v57 = vpop.permute.xlu1 %1080  ;;  %v626_v17 = vadd.f32 %v619_v63, %v595_v5  ;;  %v598_v14 = vadd.f32 %v2833_v25, %v566_v40  ;;  %v516_v63 = vadd.f32 %v512_v13, %v464_v20 }
 0x170   : > { %v3006_v34 = vpop.permute.xlu0 %1106  ;;  %v517_v20 = vadd.f32 %v513_v59, %v465_v50 }
 0x171   : > { %v657_v42 = vadd.f32 %v650_v35, %v626_v17  ;;  %v629_v38 = vadd.f32 %v2854_v45, %v598_v14  ;;  %v561_v17 = vmul.f32 %v2620_v8, %v2806_v11  ;;  %v564_v7 = vadd.f32 %v560_v60, %v516_v63 }
 0x172   : > { %v838_v11 = vsel %vm775_vm2, %v2946_v62, %v2952_v2 }
 0x173   : > { %v3011_v9 = vpop.permute.xlu1 %1104  ;;  %v689_v40 = vadd.f32 %v682_v47, %v657_v42  ;;  %v660_v5 = vadd.f32 %v2874_v56, %v629_v38  ;;  %v620_v38 = vsel %vm587_vm0, %v2844_v61, %v2836_v31  ;;  %v565_v50 = vadd.f32 %v561_v17, %v517_v20 }
 0x174   : > { %v3016_v23 = vpop.permute.xlu0 %1131 }
 0x175   : > { %v720_v41 = vadd.f32 %v713_v52, %v689_v40  ;;  %v692_v0 = vadd.f32 %v2894_v33, %v660_v5  ;;  %v596_v52 = vadd.f32 %v589_v43, %v564_v7  ;;  %v651_v40 = vsel %vm587_vm0, %v2864_v53, %v2856_v48 }
 0x176   : > { %v597_v25 = vadd.f32 %v590_v12, %v565_v50  ;;  %v3708_v50 = vld [vmem:[#allocation13_spill] sm:$0xff]  ;;  %v3709_v12 = vld [vmem:[#allocation10_spill] sm:$0xff] }
 0x177   : > { %v3021_v27 = vpop.permute.xlu1 %1129  ;;  %v751_v54 = vadd.f32 %v744_v15, %v720_v41  ;;  %v723_v13 = vadd.f32 %v2914_v46, %v692_v0  ;;  %v627_v63 = vadd.f32 %v620_v38, %v596_v52  ;;  %v621_v15 = vsel %vm587_vm0, %v2836_v31, %v2854_v45 }
 0x178   : > { %v3031_v22 = vpop.permute.xlu0 %1155  ;;  %v652_v0 = vsel %vm587_vm0, %v2856_v48, %v2874_v56  ;;  %v684_v45 = vsel %vm681_vm1, %v2876_v4, %v2894_v33  ;;  %v777_v4 = vsel %vm775_vm2, %v2936_v44, %v2933_v37  ;;  %v3707_v44 = vld [vmem:[#allocation6_spill] sm:$0xff] }
 0x179   : > { %v783_v42 = vadd.f32 %v776_v10, %v751_v54  ;;  %v754_v8 = vadd.f32 %v2931_v55, %v723_v13  ;;  %v658_v41 = vadd.f32 %v651_v40, %v627_v63  ;;  %v714_v10 = vsel %vm681_vm1, %v2905_v30, %v2896_v28 }
 0x17a   : > { %v628_v54 = vadd.f32 %v621_v15, %v597_v25  ;;  %v839_v52 = vsel %vm775_vm2, %v2952_v2, %v3707_v44  ;;  %v809_v63 = vsel %vm775_vm2, %v2942_v51, %v2948_v39  ;;  %v3711_v15 = vld [vmem:[#allocation15_spill] sm:$0xff]  ;;  %v840_v25 = vsel %vm775_vm2, %v3707_v44, %v2956_v16 }
 0x17b   : > { %v3041_v58 = vpop.permute.xlu1 %1133  ;;  %v814_v49 = vadd.f32 %v807_v24, %v783_v42  ;;  %v786_v60 = vadd.f32 %v2940_v21, %v754_v8  ;;  %v690_v31 = vadd.f32 %v683_v19, %v658_v41  ;;  %v715_v24 = vsel %vm681_vm1, %v2896_v28, %v2914_v46  ;;  %v3712_v41 = vld [vmem:[#allocation8_spill] sm:$0xff] }
 0x17c   : > { %v3049_v35 = vpop.permute.xlu0 %1159  ;;  %v659_v20 = vadd.f32 %v652_v0, %v628_v54  ;;  %v746_v42 = vsel %vm681_vm1, %v2918_v29, %v2931_v55  ;;  %v808_v8 = vsel %vm775_vm2, %v2944_v36, %v2942_v51  ;;  %v778_v46 = vsel %vm775_vm2, %v2933_v37, %v2940_v21  ;;  %v3713_v0 = vld [vmem:[#allocation14_spill] sm:$0xff] }
 0x17d   : > { %v845_v59 = vadd.f32 %v838_v11, %v814_v49  ;;  %v817_v62 = vadd.f32 %v2948_v39, %v786_v60  ;;  %v721_v48 = vadd.f32 %v714_v10, %v690_v31  ;;  %v3706_v11 = vld [vmem:[#allocation9_spill] sm:$0xff]  ;;  %v3715_v31 = vld [vmem:[#allocation19_spill] sm:$0xff] }
 0x17e   : > { %v691_v33 = vadd.f32 %v684_v45, %v659_v20 }
 0x17f   : > { %v3061_v14 = vpop.permute.xlu1 %1157  ;;  %v848_v53 = vadd.f32 %v2956_v16, %v817_v62  ;;  %v903_v17 = vadd.f32 %v2954_v1, %v845_v59  ;;  %v752_v32 = vadd.f32 %v745_v6, %v721_v48  ;;  %v3710_v62 = vld [vmem:[#allocation7_spill] sm:$0xff] }
 0x180   : > { %v3063_v47 = vpop.permute.xlu0 %1183  ;;  %v722_v49 = vadd.f32 %v715_v24, %v691_v33  ;;  %v897_v37 = vsel %vm896_vm3, %v2954_v1, %v3710_v62  ;;  %v898_v39 = vsel %vm896_vm3, %v3710_v62, %v2958_v3  ;;  %v3714_v1 = vld [vmem:[#allocation11_spill] sm:$0xff]  ;;  %v3717_v24 = vld [vmem:[#allocation12_spill] sm:$0xff] }
 0x181   : > { %v956_v7 = vadd.f32 %v2964_v18, %v903_v17  ;;  %v906_v56 = vadd.f32 %v2958_v3, %v848_v53  ;;  %v784_v28 = vadd.f32 %v777_v4, %v752_v32  ;;  %v950_v53 = vsel %vm896_vm3, %v2964_v18, %v3712_v41 }
 0x182   : > { %v753_v29 = vadd.f32 %v746_v42, %v722_v49  ;;  %v1003_v54 = vsel %vm896_vm3, %v3706_v11, %v3714_v1  ;;  %v1030_v3 = vsel %vm1029_vm4, %v3708_v50, %v3717_v24  ;;  %v3718_v42 = vld [vmem:[#allocation17_spill] sm:$0xff] }
 0x183   : > { %v3083_v5 = vpop.permute.xlu1 %1181  ;;  %v959_v43 = vadd.f32 %v2968_v26, %v906_v56  ;;  %v1009_v38 = vadd.f32 %v3706_v11, %v956_v7  ;;  %v815_v55 = vadd.f32 %v808_v8, %v784_v28  ;;  %v3716_v7 = vld [vmem:[#allocation16_spill] sm:$0xff]  ;;  %v951_v56 = vsel %vm896_vm3, %v3712_v41, %v2968_v26 }
 0x184   : > { %v3085_v61 = vpop.permute.xlu0 %1208  ;;  %v785_v21 = vadd.f32 %v778_v46, %v753_v29  ;;  %v1056_v8 = vsel %vm1029_vm4, %v3713_v0, %v3718_v42  ;;  %v3719_v11 = vld [vmem:[#allocation20_spill] sm:$0xff]  ;;  %v1031_v28 = vsel %vm1029_vm4, %v3717_v24, %v3711_v15  ;;  %v3720_v46 = vld [vmem:[#allocation18_spill] sm:$0xff] }
 0x185   : > { %v1036_v60 = vadd.f32 %v3708_v50, %v1009_v38  ;;  %v1012_v40 = vadd.f32 %v3709_v12, %v959_v43  ;;  %v846_v2 = vadd.f32 %v839_v52, %v815_v55  ;;  %v1004_v43 = vsel %vm896_vm3, %v3714_v1, %v3709_v12 }
 0x186   : > { %v816_v17 = vadd.f32 %v809_v63, %v785_v21  ;;  %v1082_v44 = vsel %vm1029_vm4, %v3715_v31, %v3720_v46  ;;  %v1109_v63 = vsel %vm1108_vm5, %v3719_v11, %v3011_v9  ;;  %v1136_v1 = vsel %vm1108_vm5, %v3016_v23, %v3041_v58 }
 0x187   : > { %v3109_v13 = vpop.permute.xlu1 %1185  ;;  %v1039_v19 = vadd.f32 %v3711_v15, %v1012_v40  ;;  %v1062_v10 = vadd.f32 %v3713_v0, %v1036_v60  ;;  %v904_v51 = vadd.f32 %v897_v37, %v846_v2  ;;  %v1057_v40 = vsel %vm1029_vm4, %v3718_v42, %v3716_v7 }
 0x188   : > { %v3111_v30 = vpop.permute.xlu0 %1212  ;;  %v847_v16 = vadd.f32 %v840_v25, %v816_v17  ;;  %v1083_v2 = vsel %vm1029_vm4, %v3720_v46, %v3002_v57  ;;  %v1135_v15 = vsel %vm1108_vm5, %v3021_v27, %v3016_v23  ;;  %v1161_v0 = vsel %vm1108_vm5, %v3031_v22, %v3061_v14 }
 0x189   : > { %v1088_v45 = vadd.f32 %v3715_v31, %v1062_v10  ;;  %v957_v6 = vadd.f32 %v950_v53, %v904_v51  ;;  %v1065_v20 = vadd.f32 %v3716_v7, %v1039_v19  ;;  %v1110_v53 = vsel %vm1108_vm5, %v3011_v9, %v3006_v34 }
 0x18a   : > { %v905_v4 = vadd.f32 %v898_v39, %v847_v16  ;;  %v1162_v31 = vsel %vm1108_vm5, %v3061_v14, %v3049_v35 }
 0x18b   : > { %v3135_v36 = vpop.permute.xlu1 %1210  ;;  %v1010_v33 = vadd.f32 %v1003_v54, %v957_v6  ;;  %v1091_v32 = vadd.f32 %v3002_v57, %v1065_v20  ;;  %v1115_v38 = vadd.f32 %v3719_v11, %v1088_v45 }
 0x18c   : > { %v3137_v59 = vpop.permute.xlu0 %1236  ;;  %v958_v49 = vadd.f32 %v951_v56, %v905_v4  ;;  %v1214_v16 = vsel %vm1187_vm6, %v3085_v61, %v3135_v36 }
 0x18d   : > { %v1037_v26 = vadd.f32 %v1030_v3, %v1010_v33  ;;  %v1141_v52 = vadd.f32 %v3021_v27, %v1115_v38  ;;  %v1118_v29 = vadd.f32 %v3006_v34, %v1091_v32  ;;  %v1188_v34 = vsel %vm1187_vm6, %v3083_v5, %v3063_v47 }
 0x18e   : > { %v1011_v50 = vadd.f32 %v1004_v43, %v958_v49 }
 0x18f   : > { %v1235_v18 = vpop.permute.xlu1 %1234  ;;  %v1063_v60 = vadd.f32 %v1056_v8, %v1037_v26  ;;  %v1144_v21 = vadd.f32 %v3041_v58, %v1118_v29  ;;  %v1167_v19 = vadd.f32 %v3031_v22, %v1141_v52 }
 0x190   : > { %v3161_v48 = vpop.permute.xlu0 %1260  ;;  %v1038_v62 = vadd.f32 %v1031_v28, %v1011_v50  ;;  %v1240_v7 = vsel %vm1187_vm6, %v1235_v18, %v3137_v59 }
 0x191   : > { %v1089_v37 = vadd.f32 %v1082_v44, %v1063_v60  ;;  %v1194_v10 = vadd.f32 %v3083_v5, %v1167_v19  ;;  %v1170_v51 = vadd.f32 %v3049_v35, %v1144_v21  ;;  %v1189_v5 = vsel %vm1187_vm6, %v3063_v47, %v3109_v13 }
 0x192   : > { %v1064_v25 = vadd.f32 %v1057_v40, %v1038_v62 }
 0x193   : > { %v1239_v55 = vpop.permute.xlu1 %1238  ;;  %v1116_v41 = vadd.f32 %v1109_v63, %v1089_v37  ;;  %v1197_v22 = vadd.f32 %v3109_v13, %v1170_v51  ;;  %v1220_v45 = vadd.f32 %v3085_v61, %v1194_v10  ;;  %v1215_v61 = vsel %vm1187_vm6, %v3135_v36, %v3111_v30  ;;  %v1349_v51 = vld [vmem:[%s3659_s4] sm:$0xff] }
 0x194   : > { %v1265_v12 = vpop.permute.xlu0 %1264  ;;  %v1090_v57 = vadd.f32 %v1083_v2, %v1064_v25 }
 0x195   : > { %v1142_v17 = vadd.f32 %v1135_v15, %v1116_v41  ;;  %v1246_v20 = vadd.f32 %v1235_v18, %v1220_v45  ;;  %v1223_v35 = vadd.f32 %v3111_v30, %v1197_v22  ;;  %v1241_v18 = vsel %vm1187_vm6, %v3137_v59, %v1239_v55 }
 0x196   : > { %v1117_v9 = vadd.f32 %v1110_v53, %v1090_v57  ;;  %v2425_v59 = vmov 0.0  }
 0x197   : > { %v1263_v27 = vpop.permute.xlu1 %1262  ;;  %v1168_v54 = vadd.f32 %v1161_v0, %v1142_v17  ;;  %v1249_v32 = vadd.f32 %v1239_v55, %v1223_v35  ;;  %v1273_v13 = vadd.f32 %v3161_v48, %v1246_v20  ;;  %2279 = vmatprep.subr.bf16.mxu1 %v2425_v59  ;;  %2281 = vmatprep.mubr.msk.bf16.mxu1 %vm2426_vm8, %v2425_v59  ;;  %v1350_v17 = vld [vmem:[%s3659_s4 + $0x8] sm:$0xff]  ;;  %v3722_v20 = vld [vmem:[#allocation4_spill] sm:$0xff]  ;;  %vm1513_vm8 = vcmask 556032  }
 0x198   : > { %v1288_v39 = vpop.permute.xlu0 %1287  ;;  %v1143_v6 = vadd.f32 %v1136_v1, %v1117_v9  ;;  %v1267_v3 = vsel %vm1266_vm7, %v3161_v48, %v1263_v27  ;;  %v1268_v11 = vsel %vm1266_vm7, %v1263_v27, %v1265_v12  ;;  %v3723_v35 = vld [vmem:[#allocation3_spill] sm:$0xff] }
 0x199   : > { %v1195_v23 = vadd.f32 %v1188_v34, %v1168_v54  ;;  %v1299_v38 = vadd.f32 %v1288_v39, %v1273_v13  ;;  %v1276_v36 = vadd.f32 %v1265_v12, %v1249_v32 }
 0x19a   : > { %v1169_v56 = vadd.f32 %v1162_v31, %v1143_v6  ;;  %v3721_v6 = vmov 0  }
 0x19b   : > { %v1221_v14 = vadd.f32 %v1214_v16, %v1195_v23  ;;  %v2368_v16 = vld [vmem:[%s3658_s3] sm:$0xff]  }
 0x19c   : > { %v1292_v24 = vpop.permute.xlu0 %1291  ;;  %v1196_v4 = vadd.f32 %v1189_v5, %v1169_v56  ;;  %v3257_v23 = vld [vmem:[#allocation2] sm:$0xff] }
 0x19d   : > { %v1247_v33 = vadd.f32 %v1240_v7, %v1221_v14  ;;  %v1302_v60 = vadd.f32 %v1292_v24, %v1276_v36 }
 0x19e   : > { %v1222_v42 = vadd.f32 %v1215_v61, %v1196_v4  ;;  %v3724_v4 = vld [vmem:[#allocation5_spill] sm:$0xff] }
 0x19f   : > { %v1274_v8 = vadd.f32 %v1267_v3, %v1247_v33 }
 0x1a0   : > { %v1248_v30 = vadd.f32 %v1241_v18, %v1222_v42  ;;  %v1316_v49 = vpop.permute.xlu0 %1315  ;;  %v2151_v42 = vld [vmem:[%s3665_s10 + $0x18] sm:$0xff] }
 0x1a2   : > { %v1275_v52 = vadd.f32 %v1268_v11, %v1248_v30 }
 0x1a8   : > { %v1333_v58 = vpop.permute.xlu1 %1332 }
 0x1ac   : > { %v1290_v47 = vpop.permute.xlu1 %1289 }
 0x1ad   : > { %v1293_v43 = vsel %vm1266_vm7, %v1288_v39, %v1290_v47  ;;  %v1294_v46 = vsel %vm1266_vm7, %v1290_v47, %v1292_v24 }
 0x1ae   : > { %v1300_v26 = vadd.f32 %v1293_v43, %v1274_v8  ;;  %v1301_v55 = vadd.f32 %v1294_v46, %v1275_v52 }
 0x1b0   : > { %v1314_v28 = vpop.permute.xlu1 %1313 }
 0x1b1   : > { %v1319_v44 = vsel %vm1266_vm7, %v1314_v28, %v1316_v49  ;;  %v1325_v48 = vadd.f32 %v1314_v28, %v1299_v38 }
 0x1b2   : > { %v1326_v50 = vadd.f32 %v1319_v44, %v1300_v26 }
 0x1b3   : > { %v1335_v29 = vadd.f32 %v1333_v58, %v1325_v48  ;;  %v2150_v48 = vld [vmem:[%s3665_s10 + $0x10] sm:$0xff] }
 0x1b4   : > { %v1336_v40 = vadd.f32 %v1333_v58, %v1326_v50  ;;  %v1318_v63 = vpop.permute.xlu1 %1317 }
 0x1b5   : > { %v1339_v12 = vmax.f32 %v1335_v29, 0.0  ;;  %v1320_v62 = vsel %vm1266_vm7, %v1316_v49, %v1318_v63  ;;  %v1328_v37 = vadd.f32 %v1318_v63, %v1302_v60 }
 0x1b6   : > { %v1340_v21 = vmax.f32 %v1336_v40, 0.0  ;;  %v1327_v2 = vadd.f32 %v1320_v62, %v1301_v55 }
 0x1b7   : > { %v1345_v15 = vpack.c.bf16 %v1339_v12, %v1339_v12  ;;  %v1338_v19 = vadd.f32 %v1333_v58, %v1328_v37 }
 0x1b8   : > { %v1346_v25 = vpack.c.bf16 %v1340_v21, %v1340_v21  ;;  %v1337_v41 = vadd.f32 %v1333_v58, %v1327_v2  ;;  %v415_v58 = vld [vmem:[%s3666_s11] sm:$0x7] }
 0x1b9   : > { %v1342_v53 = vmax.f32 %v1338_v19, 0.0  ;;  %1370 = vrot.lane.b32.xlu0 %v1345_v15, %s2427_s23  ;;  %vm416_vm12 = vcmp.gt.f32.partialorder %v415_v58, 0.5 }
 0x1ba   : > { %v1341_v0 = vmax.f32 %v1337_v41, 0.0  ;;  %1372 = vrot.lane.b32.xlu1 %v1346_v25, %s2427_s23  ;;  %v1486_v5 = vsel %vm416_vm12, 1, %v3721_v6 }
 0x1bb   : > { %v1348_v10 = vpack.c.bf16 %v1342_v53, %v1342_v53  ;;  %v1494_v56 = vrot.slane %v1486_v5, %v3722_v20  ;;  %v1490_v14 = vrot.slane %v1486_v5, %v3723_v35  ;;  %v1498_v33 = vrot.slane %v1486_v5, %v3724_v4 }
 0x1bc   : > { %v1347_v57 = vpack.c.bf16 %v1341_v0, %v1341_v0 }
 0x1bd   : > { %vm3272_vm13 = vcmp.eq.s32.totalorder %v1494_v56, 1  ;;  %vm3276_vm14 = vcmp.eq.s32.totalorder %v1490_v14, 1  ;;  %vm3280_vm15 = vcmp.eq.s32.totalorder %v1498_v33, 1 }
 0x1be   : > { %1376 = vrot.lane.b32.xlu1 %v1348_v10, %s2427_s23  ;;  %1374 = vrot.lane.b32.xlu0 %v1347_v57, %s2427_s23 }
 0x1c2   : > { %1358 = vperm.xlu1 %2366, %v1350_v17   ;;  %1353 = vperm.xlu0 %2367, %v1349_v51  }
 0x1c6   : > { %1523 = vrot.lane.b32.xlu0 %v3257_v23, %s2417_s29 }
 0x1ca   : > { %1535 = vrot.lane.b32.xlu0 %v3257_v23, %s2418_s30 }
 0x1ce   : > { %1547 = vrot.lane.b32.xlu0 %v3257_v23, %s2419_s13 }
 0x22b   : > { %v1371_v27 = vpop.permute.xlu0 %1370 }
 0x22c   : > { %v1373_v39 = vpop.permute.xlu1 %1372 }
 0x22d   : > { %v1379_v1 = vsel %vm1378_vm9, %v1371_v27, %v1373_v39 }
 0x22e   : > { %v1388_v31 = vsel %vm1386_vm10, %v1379_v1, 0 }
 0x230   : > { %v1377_v34 = vpop.permute.xlu1 %1376  ;;  %v1375_v9 = vpop.permute.xlu0 %1374 }
 0x231   : > { %v1380_v54 = vsel %vm1378_vm9, %v1373_v39, %v1375_v9  ;;  %v1381_v22 = vsel %vm1378_vm9, %v1375_v9, %v1377_v34 }
 0x232   : > { %2259 = vmatprep.subr.msk.bf16.mxu0 %vm1386_vm10, %v1380_v54  ;;  %v1394_v45 = vsel %vm1386_vm10, %v1381_v22, 0 }
 0x233   : > { %1397 = vmatpush1.bf16.msra.mxu0 %v1388_v31  ;;  %2280 = vmatpush3.bf16.msra.mxu1 %v1394_v45 }
 0x234   : > { %1800 = vmatprep.subr.bf16.mxu1 %v3721_v6 }
 0x236   : > { %2260 = vmatmul.mubr.msk.bf16.vlgmr.msra.gmra.mrb[0].mxu0 %vm1382_vm11, %v2368_v16  ;;  %2282 = vmatmul.mubr.msk.bf16.vlgmr.msra.gmra.mrb[0].mxu1 %vm1382_vm11, %v2368_v16 }
 0x241   : > { %v1354_v7 = vpop.permute.xlu0 %1353  ;;  %v1359_v24 = vpop.permute.xlu1 %1358 }
 0x245   : > { %v1524_v19 = vpop.permute.xlu0 %1523 }
 0x249   : > { %v1536_v25 = vpop.permute.xlu0 %1535 }
 0x24d   : > { %v1548_v41 = vpop.permute.xlu0 %1547 }
 0x309   : > { %v1430_v61 = vpop.f32.mrb[0].mxu0  ;;  %v1473_v3 = vpop.f32.mrb[0].mxu1 }
 0x30a   : > { %v1431_v32 = vadd.f32 %v1430_v61, %v1354_v7  ;;  %v1474_v47 = vadd.f32 %v1473_v3, %v1354_v7  ;;  %v1432_v13 = vpop.f32.mrb[1].mxu0  ;;  %v2283_v18 = vpop.f32.mrb[1].mxu1 }
 0x30b   : > { %v1433_v43 = vadd.f32 %v1432_v13, %v1354_v7  ;;  %v1434_v8 = vpop.f32.mrb[2].mxu0  ;;  %v1476_v38 = vpop.f32.mrb[2].mxu1 }
 0x30c   : > { %v1480_v30 = vmax.f32 %v1431_v32, 0.0  ;;  %v1482_v36 = vmax.f32 %v1474_v47, 0.0  ;;  %v1435_v49 = vadd.f32 %v1434_v8, %v1359_v24  ;;  %v1477_v26 = vadd.f32 %v1476_v38, %v1359_v24  ;;  %v1436_v28 = vpop.f32.mrb[3].mxu0  ;;  %v2284_v46 = vpop.f32.mrb[3].mxu1 }
 0x30d   : > { %v1481_v44 = vmax.f32 %v1433_v43, 0.0  ;;  %v1437_v52 = vadd.f32 %v1436_v28, %v1359_v24 }
 0x30e   : > { %v1483_v50 = vmax.f32 %v1435_v49, 0.0  ;;  %v1502_v59 = vsel %vm3276_vm14, %v1480_v30, 0.0  ;;  %v1485_v60 = vmax.f32 %v1477_v26, 0.0  ;;  %v1504_v63 = vsel %vm3280_vm15, %v1482_v36, 0.0 }
 0x30f   : > { %v1503_v29 = vsel %vm3272_vm13, %v1481_v44, 0.0  ;;  %v1484_v55 = vmax.f32 %v1437_v52, 0.0 }
 0x310   : > { %v1505_v40 = vsel %vm3276_vm14, %v1483_v50, 0.0  ;;  %v1507_v12 = vsel %vm3280_vm15, %v1485_v60, 0.0 }
 0x311   : > { %v1508_v62 = vpack.c.bf16 %v1505_v40, %v1502_v59  ;;  %v1510_v37 = vpack.c.bf16 %v1507_v12, %v1504_v63  ;;  %v1506_v21 = vsel %vm3272_vm13, %v1484_v55, 0.0  ;;  %v2369_v55 = vld [vmem:[%s3660_s5 + $0x4] ss:$8 sps:$4 sm:$0xff]  }
 0x312   : > { %v1509_v2 = vpack.c.bf16 %v1506_v21, %v1503_v29  ;;  %v1607_v12 = vld [vmem:[%s3661_s6 + $0x8] sm:$0xff]  ;;  %v1606_v21 = vld [vmem:[%s3661_s6] sm:$0xff] }
 0x313   : > { %1514 = vst.msk [vmem:[#allocation2 + $0x18] sm:$0xff] %vm1513_vm8, %v1510_v37  ;;  %1568 = vrot.lane.b32.xlu0 %v1508_v62, %s2421_s15  ;;  %1525 = vrot.lane.b32.xlu1 %v1508_v62, %s2417_s29  ;;  %v1857_v37 = vld [vmem:[%s3663_s8 + $0x18] sm:$0xff] }
 0x31a   : > { %v1518_v15 = vld [vmem:[#allocation2 + $0x18] sm:$0xff] }
 0x31b   : > { %1572 = vrot.lane.b32.xlu0 %v1518_v15, %s2421_s15  ;;  %1529 = vrot.lane.b32.xlu1 %v1518_v15, %s2417_s29 }
 0x31f   : > { %1586 = vrot.lane.b32.xlu0 %v1508_v62, %s2423_s17  ;;  %1537 = vrot.lane.b32.xlu1 %v1508_v62, %s2418_s30 }
 0x323   : > { %1590 = vrot.lane.b32.xlu0 %v1518_v15, %s2423_s17  ;;  %1541 = vrot.lane.b32.xlu1 %v1518_v15, %s2418_s30 }
 0x327   : > { %1527 = vrot.lane.b32.xlu0 %v1509_v2, %s2417_s29  ;;  %1549 = vrot.lane.b32.xlu1 %v1508_v62, %s2419_s13 }
 0x32b   : > { %1539 = vrot.lane.b32.xlu0 %v1509_v2, %s2418_s30  ;;  %1553 = vrot.lane.b32.xlu1 %v1518_v15, %s2419_s13 }
 0x32f   : > { %1551 = vrot.lane.b32.xlu0 %v1509_v2, %s2419_s13  ;;  %1559 = vrot.lane.b32.xlu1 %v1508_v62, %s2420_s14 }
 0x333   : > { %1561 = vrot.lane.b32.xlu0 %v1509_v2, %s2420_s14  ;;  %1563 = vrot.lane.b32.xlu1 %v1518_v15, %s2420_s14 }
 0x337   : > { %1629 = vrot.lane.b32.xlu0 %v1508_v62, %s2427_s23  ;;  %1577 = vrot.lane.b32.xlu1 %v1508_v62, %s2422_s16 }
 0x33b   : > { %1579 = vrot.lane.b32.xlu0 %v1509_v2, %s2422_s16  ;;  %1581 = vrot.lane.b32.xlu1 %v1518_v15, %s2422_s16 }
 0x33f   : > { %1627 = vrot.lane.b32.xlu0 %v3257_v23, %s2427_s23  ;;  %1595 = vrot.lane.b32.xlu1 %v1508_v62, %s2424_s18  ;;  %v1855_v62 = vld [vmem:[%s3663_s8 + $0x8] sm:$0xff] }
 0x343   : > { %1597 = vrot.lane.b32.xlu0 %v1509_v2, %s2424_s18  ;;  %1570 = vrot.lane.b32.xlu1 %v1509_v2, %s2421_s15  ;;  %s2292_s15 = smul.u32 96, %s3732_s22 }
 0x347   : > { %1599 = vrot.lane.b32.xlu1 %v1518_v15, %s2424_s18  ;;  %s3625_s18 = scalar_lea.vmem %s3667_s12, %s2292_s15 }
 0x34b   : > { %1588 = vrot.lane.b32.xlu1 %v1509_v2, %s2423_s17 }
 0x34f   : > { %1633 = vrot.lane.b32.xlu1 %v1518_v15, %s2427_s23  ;;  %v1856_v15 = vld [vmem:[%s3663_s8 + $0x10] sm:$0xff] }
 0x353   : > { %1631 = vrot.lane.b32.xlu1 %v1509_v2, %s2427_s23  ;;  %v1854_v2 = vld [vmem:[%s3663_s8] sm:$0xff] }
 0x385   : > { %v1526_v53 = vpop.permute.xlu1 %1525  ;;  %v3326_v0 = vpop.permute.xlu0 %1568 }
 0x386   : > { %v1532_v23 = vsel %vm587_vm0, %v1524_v19, %v1526_v53 }
 0x38d   : > { %v1530_v10 = vpop.permute.xlu1 %1529  ;;  %v1573_v57 = vpop.permute.xlu0 %1572 }
 0x38e   : > { %1641 = vrot.lane.b32.xlu1 %v1530_v10, %s2427_s23 }
 0x391   : > { %v1538_v17 = vpop.permute.xlu1 %1537  ;;  %v3329_v51 = vpop.permute.xlu0 %1586 }
 0x392   : > { %v1544_v5 = vsel %vm681_vm1, %v1536_v25, %v1538_v17 }
 0x395   : > { %v1542_v27 = vpop.permute.xlu1 %1541  ;;  %v3332_v1 = vpop.permute.xlu0 %1590 }
 0x396   : > { %1649 = vrot.lane.b32.xlu1 %v1542_v27, %s2427_s23 }
 0x399   : > { %v1550_v39 = vpop.permute.xlu1 %1549  ;;  %v1528_v9 = vpop.permute.xlu0 %1527 }
 0x39a   : > { %v1533_v7 = vsel %vm587_vm0, %v1526_v53, %v1528_v9  ;;  %v1556_v35 = vsel %vm775_vm2, %v1548_v41, %v1550_v39  ;;  %v1534_v3 = vsel %vm587_vm0, %v1528_v9, %v1530_v10  ;;  %vm1753_vm0 = vcmask 130048  }
 0x39b   : > { %2264 = vmatprep.mubr.msk.bf16.mxu0 %vm1753_vm0, %v2369_v55  ;;  %2265 = vmatprep.mubr.msk.bf16.mxu1 %vm1753_vm0, %v2369_v55 }
 0x39d   : > { %v1554_v34 = vpop.permute.xlu1 %1553  ;;  %v1540_v31 = vpop.permute.xlu0 %1539 }
 0x39e   : > { %1657 = vrot.lane.b32.xlu1 %v1554_v34, %s2427_s23  ;;  %v1546_v14 = vsel %vm681_vm1, %v1540_v31, %v1542_v27  ;;  %v1545_v32 = vsel %vm681_vm1, %v1538_v17, %v1540_v31 }
 0x3a1   : > { %v1560_v54 = vpop.permute.xlu1 %1559  ;;  %v1552_v16 = vpop.permute.xlu0 %1551 }
 0x3a2   : > { %1659 = vrot.lane.b32.xlu0 %v1560_v54, %s2427_s23  ;;  %v1558_v4 = vsel %vm775_vm2, %v1552_v16, %v1554_v34  ;;  %v1557_v43 = vsel %vm775_vm2, %v1550_v39, %v1552_v16 }
 0x3a5   : > { %v1564_v22 = vpop.permute.xlu1 %1563  ;;  %v1562_v56 = vpop.permute.xlu0 %1561 }
 0x3a6   : > { %1665 = vrot.lane.b32.xlu1 %v1564_v22, %s2427_s23  ;;  %1667 = vrot.lane.b32.xlu0 %v3326_v0, %s2427_s23  ;;  %v1567_v47 = vsel %vm896_vm3, %v1562_v56, %v1564_v22  ;;  %v1566_v36 = vsel %vm896_vm3, %v1560_v54, %v1562_v56 }
 0x3a9   : > { %v1578_v45 = vpop.permute.xlu1 %1577  ;;  %v1630_v61 = vpop.permute.xlu0 %1629 }
 0x3aa   : > { %1675 = vrot.lane.b32.xlu0 %v1578_v45, %s2427_s23  ;;  %1673 = vrot.lane.b32.xlu1 %v1573_v57, %s2427_s23 }
 0x3ad   : > { %v1582_v58 = vpop.permute.xlu1 %1581  ;;  %v1580_v18 = vpop.permute.xlu0 %1579 }
 0x3ae   : > { %1635 = vrot.lane.b32.xlu1 %v1532_v23, %s2427_s23  ;;  %1683 = vrot.lane.b32.xlu0 %v3329_v51, %s2427_s23  ;;  %v1585_v49 = vsel %vm1108_vm5, %v1580_v18, %v1582_v58  ;;  %v1584_v60 = vsel %vm1108_vm5, %v1578_v45, %v1580_v18 }
 0x3b1   : > { %v1596_v20 = vpop.permute.xlu1 %1595  ;;  %v1628_v30 = vpop.permute.xlu0 %1627 }
 0x3b2   : > { %1643 = vrot.lane.b32.xlu0 %v1544_v5, %s2427_s23  ;;  %1637 = vrot.lane.b32.xlu1 %v1533_v7, %s2427_s23  ;;  %v1699_v44 = vsel %vm1378_vm9, %v1628_v30, %v1630_v61 }
 0x3b5   : > { %v1571_v24 = vpop.permute.xlu1 %1570  ;;  %v1598_v59 = vpop.permute.xlu0 %1597 }
 0x3b6   : > { %1651 = vrot.lane.b32.xlu0 %v1556_v35, %s2427_s23  ;;  %1647 = vrot.lane.b32.xlu1 %v1546_v14, %s2427_s23  ;;  %v1576_v8 = vsel %vm1029_vm4, %v1571_v24, %v1573_v57  ;;  %v1575_v52 = vsel %vm1029_vm4, %v3326_v0, %v1571_v24  ;;  %v1602_v63 = vsel %vm1266_vm7, %v1596_v20, %v1598_v59 }
 0x3b9   : > { %v1600_v33 = vpop.permute.xlu1 %1599 }
 0x3ba   : > { %1639 = vrot.lane.b32.xlu0 %v1534_v3, %s2427_s23  ;;  %1655 = vrot.lane.b32.xlu1 %v1558_v4, %s2427_s23  ;;  %v1603_v29 = vsel %vm1266_vm7, %v1598_v59, %v1600_v33 }
 0x3bd   : > { %v1589_v13 = vpop.permute.xlu1 %1588 }
 0x3be   : > { %1645 = vrot.lane.b32.xlu0 %v1545_v32, %s2427_s23  ;;  %1663 = vrot.lane.b32.xlu1 %v1567_v47, %s2427_s23  ;;  %v1594_v50 = vsel %vm1187_vm6, %v1589_v13, %v3332_v1  ;;  %v1593_v40 = vsel %vm1187_vm6, %v3329_v51, %v1589_v13 }
 0x3c1   : > { %v1634_v38 = vpop.permute.xlu1 %1633 }
 0x3c2   : > { %1653 = vrot.lane.b32.xlu0 %v1557_v43, %s2427_s23  ;;  %1671 = vrot.lane.b32.xlu1 %v1576_v8, %s2427_s23 }
 0x3c5   : > { %v1632_v26 = vpop.permute.xlu1 %1631 }
 0x3c6   : > { %v1701_v28 = vsel %vm1378_vm9, %v1632_v26, %v1634_v38  ;;  %1661 = vrot.lane.b32.xlu0 %v1566_v36, %s2427_s23  ;;  %1679 = vrot.lane.b32.xlu1 %v1585_v49, %s2427_s23  ;;  %v1700_v46 = vsel %vm1378_vm9, %v1630_v61, %v1632_v26 }
 0x3c7   : > { %1757 = vmatprep.subr.bf16.mxu0 %v1700_v46  ;;  %1801 = vmatpush1.bf16.msra.mxu1 %v1701_v28 }
 0x3c8   : > { %1758 = vmatpush1.bf16.msra.mxu0 %v1699_v44  ;;  %1802 = vmatprep.subr.bf16.mxu1 %v3721_v6 }
 0x3ca   : > { %1669 = vrot.lane.b32.xlu0 %v1575_v52, %s2427_s23  ;;  %1687 = vrot.lane.b32.xlu1 %v1594_v50, %s2427_s23 }
 0x3ce   : > { %1677 = vrot.lane.b32.xlu0 %v1584_v60, %s2427_s23  ;;  %1695 = vrot.lane.b32.xlu1 %v1603_v29, %s2427_s23 }
 0x3d2   : > { %1685 = vrot.lane.b32.xlu0 %v1593_v40, %s2427_s23  ;;  %1681 = vrot.lane.b32.xlu1 %v1582_v58, %s2427_s23  ;;  %v2371_v40 = vld [vmem:[%s3660_s5] ss:$8 sps:$4 sm:$0xff]  }
 0x3d6   : > { %1697 = vrot.lane.b32.xlu1 %v1600_v33, %s2427_s23  ;;  %1693 = vrot.lane.b32.xlu0 %v1602_v63, %s2427_s23 }
 0x3da   : > { %1615 = vperm.xlu1 %2366, %v1607_v12   ;;  %1691 = vrot.lane.b32.xlu0 %v1596_v20, %s2427_s23 }
 0x3de   : > { %1865 = vperm.xlu1 %2366, %v1855_v62   ;;  %1689 = vrot.lane.b32.xlu0 %v3332_v1, %s2427_s23 }
 0x3e2   : > { %1875 = vperm.xlu1 %2366, %v1857_v37   ;;  %1610 = vperm.xlu0 %2367, %v1606_v21   ;;  %v2372_v21 = vld [vmem:[%s3662_s7] sm:$0xff]  }
 0x3e6   : > { %1860 = vperm.xlu0 %2367, %v1854_v2  }
 0x3ea   : > { %1870 = vperm.xlu0 %2367, %v1856_v15  }
 0x400   : > { %v1642_v19 = vpop.permute.xlu1 %1641 }
 0x408   : > { %v1650_v25 = vpop.permute.xlu1 %1649 }
 0x410   : > { %v1658_v41 = vpop.permute.xlu1 %1657 }
 0x414   : > { %v1660_v53 = vpop.permute.xlu0 %1659 }
 0x418   : > { %v1666_v0 = vpop.permute.xlu1 %1665  ;;  %v1668_v10 = vpop.permute.xlu0 %1667 }
 0x41c   : > { %v1674_v57 = vpop.permute.xlu1 %1673  ;;  %v1676_v17 = vpop.permute.xlu0 %1675 }
 0x420   : > { %v1636_v51 = vpop.permute.xlu1 %1635  ;;  %v1684_v27 = vpop.permute.xlu0 %1683 }
 0x424   : > { %v1638_v39 = vpop.permute.xlu1 %1637  ;;  %v1644_v1 = vpop.permute.xlu0 %1643 }
 0x425   : > { %v1702_v16 = vsel %vm1378_vm9, %v1636_v51, %v1638_v39 }
 0x428   : > { %v1648_v34 = vpop.permute.xlu1 %1647  ;;  %v1652_v9 = vpop.permute.xlu0 %1651 }
 0x429   : > { %v1707_v5 = vsel %vm1378_vm9, %v1648_v34, %v1650_v25 }
 0x42c   : > { %v1656_v54 = vpop.permute.xlu1 %1655  ;;  %v1640_v22 = vpop.permute.xlu0 %1639 }
 0x42d   : > { %v1704_v31 = vsel %vm1378_vm9, %v1640_v22, %v1642_v19  ;;  %v1703_v45 = vsel %vm1378_vm9, %v1638_v39, %v1640_v22  ;;  %v1710_v14 = vsel %vm1378_vm9, %v1656_v54, %v1658_v41 }
 0x42e   : > { %1759 = vmatprep.subr.bf16.mxu0 %v1703_v45  ;;  %1803 = vmatpush1.bf16.msra.mxu1 %v1704_v31 }
 0x42f   : > { %1760 = vmatpush1.bf16.msra.mxu0 %v1702_v16  ;;  %1804 = vmatprep.subr.bf16.mxu1 %v3721_v6 }
 0x430   : > { %v1664_v23 = vpop.permute.xlu1 %1663  ;;  %v1646_v58 = vpop.permute.xlu0 %1645 }
 0x431   : > { %v1705_v7 = vsel %vm1378_vm9, %v1644_v1, %v1646_v58  ;;  %v1706_v20 = vsel %vm1378_vm9, %v1646_v58, %v1648_v34  ;;  %v1713_v33 = vsel %vm1378_vm9, %v1664_v23, %v1666_v0 }
 0x432   : > { %1761 = vmatprep.subr.bf16.mxu0 %v1706_v20  ;;  %1805 = vmatpush1.bf16.msra.mxu1 %v1707_v5  ;;  %v2373_v20 = vld [vmem:[%s3662_s7 + $0x8] sm:$0xff]  }
 0x433   : > { %1762 = vmatpush1.bf16.msra.mxu0 %v1705_v7  ;;  %1806 = vmatprep.subr.bf16.mxu1 %v3721_v6 }
 0x434   : > { %v1672_v56 = vpop.permute.xlu1 %1671  ;;  %v1654_v35 = vpop.permute.xlu0 %1653 }
 0x435   : > { %v1708_v24 = vsel %vm1378_vm9, %v1652_v9, %v1654_v35  ;;  %v1709_v61 = vsel %vm1378_vm9, %v1654_v35, %v1656_v54  ;;  %v1716_v43 = vsel %vm1378_vm9, %v1672_v56, %v1674_v57 }
 0x436   : > { %1763 = vmatprep.subr.bf16.mxu0 %v1709_v61  ;;  %1807 = vmatpush1.bf16.msra.mxu1 %v1710_v14 }
 0x437   : > { %1764 = vmatpush1.bf16.msra.mxu0 %v1708_v24  ;;  %1808 = vmatprep.subr.bf16.mxu1 %v3721_v6 }
 0x438   : > { %v1680_v3 = vpop.permute.xlu1 %1679  ;;  %v1662_v4 = vpop.permute.xlu0 %1661 }
 0x439   : > { %v1711_v32 = vsel %vm1378_vm9, %v1660_v53, %v1662_v4  ;;  %v1712_v47 = vsel %vm1378_vm9, %v1662_v4, %v1664_v23 }
 0x43a   : > { %1765 = vmatprep.subr.bf16.mxu0 %v1712_v47  ;;  %1809 = vmatpush1.bf16.msra.mxu1 %v1713_v33 }
 0x43b   : > { %1766 = vmatpush1.bf16.msra.mxu0 %v1711_v32  ;;  %1810 = vmatprep.subr.bf16.mxu1 %v3721_v6 }
 0x43c   : > { %v1688_v13 = vpop.permute.xlu1 %1687  ;;  %v1670_v18 = vpop.permute.xlu0 %1669 }
 0x43d   : > { %v1714_v8 = vsel %vm1378_vm9, %v1668_v10, %v1670_v18  ;;  %v1715_v38 = vsel %vm1378_vm9, %v1670_v18, %v1672_v56 }
 0x43e   : > { %1767 = vmatprep.subr.bf16.mxu0 %v1715_v38  ;;  %1811 = vmatpush1.bf16.msra.mxu1 %v1716_v43 }
 0x43f   : > { %1768 = vmatpush1.bf16.msra.mxu0 %v1714_v8  ;;  %1812 = vmatprep.subr.bf16.mxu1 %v3721_v6 }
 0x440   : > { %v1696_v30 = vpop.permute.xlu1 %1695  ;;  %v1678_v36 = vpop.permute.xlu0 %1677 }
 0x441   : > { %v1717_v49 = vsel %vm1378_vm9, %v1676_v17, %v1678_v36  ;;  %v1718_v26 = vsel %vm1378_vm9, %v1678_v36, %v1680_v3 }
 0x442   : > { %1769 = vmatprep.subr.bf16.mxu0 %v1718_v26 }
 0x443   : > { %1770 = vmatpush1.bf16.msra.mxu0 %v1717_v49 }
 0x444   : > { %v1682_v28 = vpop.permute.xlu1 %1681  ;;  %v1686_v46 = vpop.permute.xlu0 %1685 }
 0x445   : > { %v1719_v44 = vsel %vm1378_vm9, %v1680_v3, %v1682_v28  ;;  %v1720_v52 = vsel %vm1378_vm9, %v1684_v27, %v1686_v46  ;;  %v1721_v50 = vsel %vm1378_vm9, %v1686_v46, %v1688_v13 }
 0x446   : > { %1771 = vmatprep.subr.bf16.mxu0 %v1721_v50  ;;  %1813 = vmatpush1.bf16.msra.mxu1 %v1719_v44 }
 0x447   : > { %1772 = vmatpush1.bf16.msra.mxu0 %v1720_v52  ;;  %1814 = vmatprep.subr.bf16.mxu1 %v3721_v6 }
 0x448   : > { %v1694_v59 = vpop.permute.xlu0 %1693  ;;  %v1698_v62 = vpop.permute.xlu1 %1697 }
 0x449   : > { %v1724_v60 = vsel %vm1378_vm9, %v1694_v59, %v1696_v30  ;;  %v1725_v37 = vsel %vm1378_vm9, %v1696_v30, %v1698_v62 }
 0x44a   : > { %1773 = vmatprep.subr.bf16.mxu0 %v1724_v60 }
 0x44c   : > { %v1692_v29 = vpop.permute.xlu0 %1691 }
 0x44d   : > { %v1723_v55 = vsel %vm1378_vm9, %v1692_v29, %v1694_v59 }
 0x44e   : > { %1774 = vmatpush1.bf16.msra.mxu0 %v1723_v55 }
 0x450   : > { %v1690_v63 = vpop.permute.xlu0 %1689 }
 0x451   : > { %v1722_v12 = vsel %vm1378_vm9, %v1688_v13, %v1690_v63  ;;  %1790 = vmatmul.mubr.bf16.vlgmr.msra.gmra.mrb[4].mxu0 %v2371_v40 }
 0x452   : > { %1815 = vmatpush1.bf16.msra.mxu1 %v1722_v12  ;;  %1926 = vmatprep.mubr.bf16.mxu0 %v3721_v6 }
 0x453   : > { %1816 = vmatprep.subr.bf16.mxu1 %v3721_v6 }
 0x456   : > { %1817 = vmatpush1.bf16.msra.mxu1 %v1725_v37 }
 0x459   : > { %1833 = vmatmul.mubr.bf16.vlgmr.msra.gmra.mrb[4].mxu1 %v2371_v40  ;;  %v1616_v41 = vpop.permute.xlu1 %1615 }
 0x45a   : > { %2287 = vmatprep.mubr.msk.bf16.mxu1 %vm1753_vm0, %v2372_v21 }
 0x45d   : > { %v1866_v56 = vpop.permute.xlu1 %1865 }
 0x461   : > { %v1611_v2 = vpop.permute.xlu0 %1610 }
 0x465   : > { %v1861_v14 = vpop.permute.xlu0 %1860 }
 0x469   : > { %v1871_v13 = vpop.permute.xlu0 %1870 }
 0x524   : > { %v1791_v15 = vpop.f32.mrb[4].mxu0 }
 0x525   : > { %v1792_v19 = vadd.f32 %v1791_v15, %v1611_v2  ;;  %v1793_v25 = vpop.f32.mrb[5].mxu0 }
 0x526   : > { %v1794_v53 = vadd.f32 %v1793_v25, %v1611_v2  ;;  %v1795_v0 = vpop.f32.mrb[6].mxu0 }
 0x527   : > { %v1796_v10 = vadd.f32 %v1795_v0, %v1616_v41  ;;  %v1797_v57 = vpop.f32.mrb[7].mxu0  ;;  %v1841_v51 = vmax.f32 %v1792_v19, 0.0 }
 0x528   : > { %v1798_v17 = vadd.f32 %v1797_v57, %v1616_v41  ;;  %v1842_v39 = vmax.f32 %v1794_v53, 0.0 }
 0x529   : > { %v1844_v27 = vmax.f32 %v1796_v10, 0.0 }
 0x52a   : > { %v1845_v1 = vmax.f32 %v1798_v17, 0.0 }
 0x52b   : > { %v1851_v34 = vpack.c.bf16 %v1844_v27, %v1841_v51 }
 0x52c   : > { %v1852_v9 = vpack.c.bf16 %v1845_v1, %v1842_v39  ;;  %v1834_v54 = vpop.f32.mrb[4].mxu1 }
 0x52d   : > { %v1835_v22 = vadd.f32 %v1834_v54, %v1611_v2  ;;  %v1836_v31 = vpop.f32.mrb[5].mxu1 }
 0x52e   : > { %v1837_v45 = vpop.f32.mrb[6].mxu1  ;;  %1894 = vmatprep.subr.bf16.mxu0 %v1852_v9  ;;  %v2114_v31 = vld [vmem:[%s3664_s9 + $0x10] sm:$0xff] }
 0x52f   : > { %v1838_v16 = vadd.f32 %v1837_v45, %v1616_v41  ;;  %v1839_v23 = vpop.f32.mrb[7].mxu1  ;;  %1895 = vmatpush1.bf16.msra.mxu0 %v1851_v34  ;;  %v1843_v58 = vmax.f32 %v1835_v22, 0.0  ;;  %v2112_v22 = vld [vmem:[%s3664_s9] sm:$0xff]  ;;  %v2115_v45 = vld [vmem:[%s3664_s9 + $0x18] sm:$0xff] }
 0x530   : > { %v2149_v23 = vld [vmem:[%s3665_s10 + $0x8] sm:$0xff] }
 0x531   : > { %v1846_v5 = vmax.f32 %v1838_v16, 0.0  ;;  %v2113_v16 = vld [vmem:[%s3664_s9 + $0x8] sm:$0xff] }
 0x532   : > { %2268 = vmatmul.mubr.msk.bf16.vlgmr.msra.gmra.mrb[8].mxu0 %vm1753_vm0, %v2372_v21 }
 0x533   : > { %v1853_v7 = vpack.c.bf16 %v1846_v5, %v1843_v58  ;;  %1936 = vmatprep.mubr.bf16.mxu0 %v3721_v6  ;;  %v1876_v6 = vpop.permute.xlu1 %1875  ;;  %v2148_v58 = vld [vmem:[%s3665_s10] sm:$0xff] }
 0x535   : > { %2285 = vmatprep.subr.bf16.mxu1 %v1853_v7 }
 0x536   : > { %2286 = vmatpush3.bf16.msra.mxu1 %v1853_v7 }
 0x539   : > { %2288 = vmatmul.mubr.msk.bf16.vlgmr.msra.gmra.mrb[8].mxu1 %vm1753_vm0, %v2373_v20 }
 0x53a   : > { %2269 = vmatmul.mubr.msk.bf16.gmra.mrb[12].mxu0 %vm1753_vm0, %v2373_v20 }
 0x605   : > { %v1928_v35 = vpop.f32.mrb[8].mxu0 }
 0x606   : > { %v1930_v24 = vpop.f32.mrb[9].mxu0  ;;  %v3462_v4 = vadd.f32 %v1928_v35, %v1861_v14 }
 0x607   : > { %v1932_v61 = vpop.f32.mrb[10].mxu0  ;;  %v3464_v33 = vadd.f32 %v1930_v24, %v1861_v14 }
 0x608   : > { %v1934_v3 = vpop.f32.mrb[11].mxu0  ;;  %v3466_v32 = vadd.f32 %v1932_v61, %v1866_v56  ;;  %v1996_v43 = vsel %vm3276_vm14, %v3462_v4, 0.0 }
 0x609   : > { %v3468_v47 = vadd.f32 %v1934_v3, %v1866_v56  ;;  %v1997_v30 = vsel %vm3272_vm13, %v3464_v33, 0.0 }
 0x60a   : > { %v1999_v44 = vsel %vm3276_vm14, %v3466_v32, 0.0  ;;  %v2008_v12 = vadd.f32 %v1997_v30, %v1996_v43 }
 0x60b   : > { %v2000_v52 = vsel %vm3272_vm13, %v3468_v47, 0.0 }
 0x60c   : > { %v2289_v18 = vpop.f32.mrb[8].mxu1  ;;  %v2013_v2 = vadd.f32 %v2000_v52, %v1999_v44 }
 0x60d   : > { %v1938_v8 = vpop.f32.mrb[12].mxu0  ;;  %v1981_v38 = vpop.f32.mrb[9].mxu1  ;;  %v3476_v36 = vadd.f32 %v2289_v18, %v1871_v13 }
 0x60e   : > { %v3478_v49 = vadd.f32 %v1938_v8, %v1871_v13  ;;  %v1982_v26 = vadd.f32 %v1981_v38, %v1861_v14  ;;  %v1940_v28 = vpop.f32.mrb[13].mxu0  ;;  %v2290_v46 = vpop.f32.mrb[10].mxu1 }
 0x60f   : > { %v3486_v50 = vadd.f32 %v1940_v28, %v1871_v13  ;;  %v1942_v59 = vpop.f32.mrb[14].mxu0  ;;  %v1984_v60 = vpop.f32.mrb[11].mxu1  ;;  %v2004_v15 = vsel %vm3280_vm15, %v3476_v36, 0.0  ;;  %v3504_v41 = vadd.f32 %v2290_v46, %v1876_v6 }
 0x610   : > { %v2002_v29 = vsel %vm3276_vm14, %v3478_v49, 0.0  ;;  %v1998_v55 = vsel %vm3280_vm15, %v1982_v26, 0.0  ;;  %v3493_v40 = vadd.f32 %v1942_v59, %v1876_v6  ;;  %v1944_v63 = vpop.f32.mrb[15].mxu0  ;;  %v1985_v21 = vadd.f32 %v1984_v60, %v1866_v56 }
 0x611   : > { %v2009_v62 = vsel %vm1513_vm8, %v1998_v55, 0.0  ;;  %v2003_v37 = vsel %vm3272_vm13, %v3486_v50, 0.0  ;;  %v3502_v19 = vadd.f32 %v1944_v63, %v1876_v6  ;;  %v2019_v27 = vsel %vm1513_vm8, %v2004_v15, 0.0 }
 0x612   : > { %v2018_v25 = vadd.f32 %v2003_v37, %v2002_v29  ;;  %v2001_v53 = vsel %vm3280_vm15, %v1985_v21, 0.0  ;;  %v2010_v0 = vadd.f32 %v2009_v62, %v2008_v12  ;;  %v2005_v10 = vsel %vm3276_vm14, %v3493_v40, 0.0 }
 0x613   : > { %v2014_v57 = vsel %vm1513_vm8, %v2001_v53, 0.0  ;;  %v2006_v17 = vsel %vm3272_vm13, %v3502_v19, 0.0  ;;  %v2007_v39 = vsel %vm3280_vm15, %v3504_v41, 0.0 }
 0x614   : > { %2011 = vadd.xlane.f32.xlu0 %v2010_v0  ;;  %v2015_v51 = vadd.f32 %v2014_v57, %v2013_v2  ;;  %v2023_v1 = vadd.f32 %v2006_v17, %v2005_v10  ;;  %v2020_v34 = vadd.f32 %v2019_v27, %v2018_v25  ;;  %v2024_v9 = vsel %vm1513_vm8, %v2007_v39, 0.0 }
 0x616   : > { %2016 = vadd.xlane.f32.xlu1 %v2015_v51  ;;  %v2025_v54 = vadd.f32 %v2024_v9, %v2023_v1 }
 0x618   : > { %2021 = vadd.xlane.f32.xlu0 %v2020_v34 }
 0x61c   : > { %2026 = vadd.xlane.f32.xlu0 %v2025_v54 }
 0x627   : > { %2118 = vperm.xlu1 %2366, %v2112_v22  }
 0x62b   : > { %2128 = vperm.xlu1 %2366, %v2114_v31  }
 0x62f   : > { %2133 = vperm.xlu1 %2366, %v2115_v45  }
 0x632   : > { %2123 = vperm.xlu0 %2367, %v2113_v16  }
 0x633   : > { %2159 = vperm.xlu1 %2366, %v2149_v23  }
 0x636   : > { %2154 = vperm.xlu0 %2367, %v2148_v58  }
 0x6a1   : > { %v2012_v5 = vpop.xlane.xlu0 %2011 }
 0x6a2   : > { %v2028_v7 = vmul.f32 0.00390625, %v2012_v5 }
 0x6a3   : > { %v2017_v20 = vpop.xlane.xlu1 %2016 }
 0x6a4   : > { %v3539_v56 = vsub.f32 %v3462_v4, %v2028_v7  ;;  %v3542_v35 = vsub.f32 %v3464_v33, %v2028_v7  ;;  %v3544_v14 = vsub.f32 %v1982_v26, %v2028_v7  ;;  %v2029_v24 = vmul.f32 0.00390625, %v2017_v20 }
 0x6a5   : > { %v2022_v61 = vpop.xlane.xlu0 %2021 }
 0x6a6   : > { %v2044_v3 = vsel %vm3276_vm14, %v3539_v56, 0.0  ;;  %v2045_v6 = vsel %vm3272_vm13, %v3542_v35, 0.0  ;;  %v2046_v4 = vsel %vm3280_vm15, %v3544_v14, 0.0  ;;  %v3556_v13 = vsub.f32 %v3466_v32, %v2029_v24 }
 0x6a7   : > { %v2056_v33 = vmul.f32 %v2044_v3, %v2044_v3  ;;  %v2057_v18 = vmul.f32 %v2045_v6, %v2045_v6  ;;  %v3559_v43 = vsub.f32 %v3468_v47, %v2029_v24  ;;  %v3561_v8 = vsub.f32 %v1985_v21, %v2029_v24  ;;  %v2119_v22 = vpop.permute.xlu1 %2118 }
 0x6a8   : > { %v2047_v38 = vsel %vm3276_vm14, %v3556_v13, 0.0  ;;  %v2030_v30 = vmul.f32 0.00390625, %v2022_v61  ;;  %v2058_v26 = vmul.f32 %v2046_v4, %v2046_v4 }
 0x6a9   : > { %v2048_v28 = vsel %vm3272_vm13, %v3559_v43, 0.0  ;;  %v2049_v32 = vsel %vm3280_vm15, %v3561_v8, 0.0  ;;  %v2059_v46 = vmul.f32 %v2047_v38, %v2047_v38  ;;  %v2027_v44 = vpop.xlane.xlu0 %2026  ;;  %v2068_v47 = vadd.f32 %v2057_v18, %v2056_v33 }
 0x6aa   : > { %v2060_v52 = vmul.f32 %v2048_v28, %v2048_v28  ;;  %v3573_v59 = vsub.f32 %v3478_v49, %v2030_v30  ;;  %v3576_v60 = vsub.f32 %v3486_v50, %v2030_v30  ;;  %v3579_v29 = vsub.f32 %v3476_v36, %v2030_v30 }
 0x6ab   : > { %v2031_v55 = vmul.f32 0.00390625, %v2027_v44  ;;  %v2069_v63 = vsel %vm1513_vm8, %v2058_v26, 0.0  ;;  %v2061_v12 = vmul.f32 %v2049_v32, %v2049_v32  ;;  %v2129_v31 = vpop.permute.xlu1 %2128 }
 0x6ac   : > { %v2050_v62 = vsel %vm3276_vm14, %v3573_v59, 0.0  ;;  %v2051_v37 = vsel %vm3272_vm13, %v3576_v60, 0.0  ;;  %v2052_v49 = vsel %vm3280_vm15, %v3579_v29, 0.0  ;;  %v2070_v50 = vadd.f32 %v2069_v63, %v2068_v47 }
 0x6ad   : > { %v2062_v21 = vmul.f32 %v2050_v62, %v2050_v62  ;;  %v2063_v36 = vmul.f32 %v2051_v37, %v2051_v37  ;;  %v3592_v2 = vsub.f32 %v3493_v40, %v2031_v55  ;;  %v3595_v15 = vsub.f32 %v3502_v19, %v2031_v55 }
 0x6ae   : > { %v3598_v25 = vsub.f32 %v3504_v41, %v2031_v55  ;;  %2071 = vadd.xlane.f32.xlu1 %v2070_v50  ;;  %v2073_v53 = vadd.f32 %v2060_v52, %v2059_v46  ;;  %v2074_v0 = vsel %vm1513_vm8, %v2061_v12, 0.0  ;;  %v2064_v10 = vmul.f32 %v2052_v49, %v2052_v49 }
 0x6af   : > { %v2053_v57 = vsel %vm3276_vm14, %v3592_v2, 0.0  ;;  %v2054_v40 = vsel %vm3272_vm13, %v3595_v15, 0.0  ;;  %v2078_v17 = vadd.f32 %v2063_v36, %v2062_v21  ;;  %v2134_v45 = vpop.permute.xlu1 %2133 }
 0x6b0   : > { %v2055_v19 = vsel %vm3280_vm15, %v3598_v25, 0.0  ;;  %v2065_v41 = vmul.f32 %v2053_v57, %v2053_v57  ;;  %v2066_v51 = vmul.f32 %v2054_v40, %v2054_v40  ;;  %v2075_v27 = vadd.f32 %v2074_v0, %v2073_v53 }
 0x6b1   : > { %v2079_v39 = vsel %vm1513_vm8, %v2064_v10, 0.0  ;;  %v2067_v1 = vmul.f32 %v2055_v19, %v2055_v19  ;;  %v2124_v16 = vpop.permute.xlu0 %2123 }
 0x6b2   : > { %2076 = vadd.xlane.f32.xlu0 %v2075_v27  ;;  %v2080_v34 = vadd.f32 %v2079_v39, %v2078_v17  ;;  %v2083_v9 = vadd.f32 %v2066_v51, %v2065_v41 }
 0x6b3   : > { %v2084_v11 = vsel %vm1513_vm8, %v2067_v1, 0.0  ;;  %v2160_v23 = vpop.permute.xlu1 %2159 }
 0x6b4   : > { %2081 = vadd.xlane.f32.xlu1 %v2080_v34  ;;  %v2085_v54 = vadd.f32 %v2084_v11, %v2083_v9 }
 0x6b5   : > { %v2155_v58 = vpop.permute.xlu0 %2154 }
 0x6b6   : > { %2086 = vadd.xlane.f32.xlu0 %v2085_v54 }
 0x6c5   : > { %2169 = vperm.xlu1 %2366, %v2151_v42  }
 0x6cc   : > { %2164 = vperm.xlu0 %2367, %v2150_v48  }
 0x73b   : > { %v2072_v5 = vpop.xlane.xlu1 %2071 }
 0x73c   : > { %v2088_v7 = vmul.f32 0.00390625, %v2072_v5 }
 0x73e   : > { %v2092_v20 = vadd.f32 1e-05, %v2088_v7 }
 0x73f   : > { %v2077_v24 = vpop.xlane.xlu0 %2076 }
 0x740   : > { %2374 = vrsqrt.f32 %v2092_v20  ;;  %v2089_v61 = vmul.f32 0.00390625, %v2077_v24 }
 0x741   : > { %v2082_v3 = vpop.xlane.xlu1 %2081 }
 0x742   : > { %v2093_v6 = vadd.f32 1e-05, %v2089_v61  ;;  %v2090_v4 = vmul.f32 0.00390625, %v2082_v3 }
 0x743   : > { %v2087_v33 = vpop.xlane.xlu0 %2086 }
 0x744   : > { %2376 = vrsqrt.f32 %v2093_v6  ;;  %v2094_v18 = vadd.f32 1e-05, %v2090_v4  ;;  %v2091_v38 = vmul.f32 0.00390625, %v2087_v33 }
 0x746   : > { %2378 = vrsqrt.f32 %v2094_v18  ;;  %v2095_v30 = vadd.f32 1e-05, %v2091_v38 }
 0x748   : > { %2380 = vrsqrt.f32 %v2095_v30 }
 0x74a   : > { %v2375_v26 = vpop.eup %2374 }
 0x74b   : > { %v2100_v28 = vmul.f32 %v2375_v26, %v3539_v56  ;;  %v2101_v32 = vmul.f32 %v2375_v26, %v3542_v35  ;;  %v2102_v46 = vmul.f32 %v2375_v26, %v3544_v14 }
 0x74d   : > { %v2136_v44 = vmul.f32 %v2119_v22, %v2100_v28  ;;  %v2137_v47 = vmul.f32 %v2119_v22, %v2101_v32  ;;  %v2138_v52 = vmul.f32 %v2119_v22, %v2102_v46 }
 0x74e   : > { %v2377_v55 = vpop.eup %2376 }
 0x74f   : > { %v2172_v63 = vadd.f32 %v2155_v58, %v2136_v44  ;;  %v2173_v12 = vadd.f32 %v2155_v58, %v2137_v47  ;;  %v2174_v62 = vadd.f32 %v2155_v58, %v2138_v52  ;;  %v2103_v56 = vmul.f32 %v2377_v55, %v3556_v13 }
 0x750   : > { %v2379_v35 = vpop.eup %2378  ;;  %v2104_v14 = vmul.f32 %v2377_v55, %v3559_v43  ;;  %v2105_v37 = vmul.f32 %v2377_v55, %v3561_v8 }
 0x751   : > { %2184 = vst [vmem:[%s3625_s18] sm:$0xff] %v2172_v63  ;;  %2185 = vst [vmem:[%s3625_s18 + $0x8] sm:$0xff] %v2173_v12  ;;  %v2139_v49 = vmul.f32 %v2124_v16, %v2103_v56  ;;  %v2106_v50 = vmul.f32 %v2379_v35, %v3573_v59  ;;  %v2107_v21 = vmul.f32 %v2379_v35, %v3576_v60 }
 0x752   : > { %2186 = vst.msk [vmem:[%s3625_s18 + $0x10] sm:$0xff] %vm1513_vm8, %v2174_v62  ;;  %v2108_v36 = vmul.f32 %v2379_v35, %v3579_v29  ;;  %v2381_v53 = vpop.eup %2380  ;;  %v2140_v0 = vmul.f32 %v2124_v16, %v2104_v14  ;;  %v2141_v13 = vmul.f32 %v2124_v16, %v2105_v37 }
 0x753   : > { %v2175_v43 = vadd.f32 %v2160_v23, %v2139_v49  ;;  %v2109_v8 = vmul.f32 %v2381_v53, %v3592_v2  ;;  %v2110_v10 = vmul.f32 %v2381_v53, %v3595_v15  ;;  %v2111_v57 = vmul.f32 %v2381_v53, %v3598_v25  ;;  %v2165_v2 = vpop.permute.xlu0 %2164  ;;  %v2170_v15 = vpop.permute.xlu1 %2169 }
 0x754   : > { %v2176_v40 = vadd.f32 %v2160_v23, %v2140_v0  ;;  %v2177_v17 = vadd.f32 %v2160_v23, %v2141_v13  ;;  %v2142_v19 = vmul.f32 %v2129_v31, %v2106_v50  ;;  %v2143_v59 = vmul.f32 %v2129_v31, %v2107_v21 }
 0x755   : > { %2187 = vst [vmem:[%s3625_s18 + $0x18] sm:$0xff] %v2175_v43  ;;  %v2145_v60 = vmul.f32 %v2134_v45, %v2109_v8  ;;  %v2146_v29 = vmul.f32 %v2134_v45, %v2110_v10  ;;  %v2147_v41 = vmul.f32 %v2134_v45, %v2111_v57  ;;  %v2144_v51 = vmul.f32 %v2129_v31, %v2108_v36 }
 0x756   : > { %2188 = vst [vmem:[%s3625_s18 + $0x20] sm:$0xff] %v2176_v40  ;;  %2189 = vst.msk [vmem:[%s3625_s18 + $0x28] sm:$0xff] %vm1513_vm8, %v2177_v17  ;;  %v2178_v25 = vadd.f32 %v2165_v2, %v2142_v19  ;;  %v2179_v27 = vadd.f32 %v2165_v2, %v2143_v59 }
 0x757   : > { %v2181_v39 = vadd.f32 %v2170_v15, %v2145_v60  ;;  %v2182_v1 = vadd.f32 %v2170_v15, %v2146_v29  ;;  %v2183_v34 = vadd.f32 %v2170_v15, %v2147_v41  ;;  %v2180_v9 = vadd.f32 %v2165_v2, %v2144_v51 }
 0x758   : > { %2190 = vst [vmem:[%s3625_s18 + $0x30] sm:$0xff] %v2178_v25  ;;  %2191 = vst [vmem:[%s3625_s18 + $0x38] sm:$0xff] %v2179_v27 }
 0x759   : > { %2193 = vst [vmem:[%s3625_s18 + $0x48] sm:$0xff] %v2181_v39  ;;  %2194 = vst [vmem:[%s3625_s18 + $0x50] sm:$0xff] %v2182_v1 }
 0x75a   : > { %2195 = vst.msk [vmem:[%s3625_s18 + $0x58] sm:$0xff] %vm1513_vm8, %v2183_v34  ;;  %2192 = vst.msk [vmem:[%s3625_s18 + $0x40] sm:$0xff] %vm1513_vm8, %v2180_v9 }
 0x75b PF: > { %s22_s21 = sadd.s32 1, %s2388_s21  }
 0x75c   : > { %p19_p4 = scmp.ge.s32.totalorder %s22_s21, 4  }
 0x75e   :  { %21 = sbr.rel (!%p19_p4) target bundleno = 1 (0x1), region = 98 }

</bundles_post_ra>
